<compile_context>
chip_gen: v6e
topology: v6e:2x2x1
jax: 0.10.0
libtpu: 0.0.40
codegen_flags: <defaults>
</compile_context>

<pallas_src>
import functools

import jax
import jax.numpy as jnp
from jax import lax
from jax.experimental import pallas as pl
from jax.experimental.pallas import tpu as pltpu


def _layernorm(x, w, b, eps=1e-5):
    mu = jnp.mean(x, axis=-1, keepdims=True)
    var = jnp.mean((x - mu) ** 2, axis=-1, keepdims=True)  # biased, like PyTorch
    return (x - mu) * lax.rsqrt(var + eps) * w + b


def decoder_block_kernel(x_ref, wqkv_ref, bqkv_ref, wo_ref, bo_ref,
                         ln1w_ref, ln1b_ref, w1_ref, b1_ref, w2_ref, b2_ref,
                         ln2w_ref, ln2b_ref, o_ref, *, n_heads, approx_gelu):
    x = x_ref[...]                               # (S, E) f32 -- batch dim squeezed
    S, E = x.shape
    H = n_heads
    Dh = E // H

    # ---- fused QKV projection: bf16 operands, f32 accumulation.
    # Weights are pre-transposed to (E, 3E) and the Q columns already carry
    # the 1/sqrt(Dh) scale (folded in the wrapper).
    qkv = jnp.dot(x.astype(jnp.bfloat16), wqkv_ref[...],
                  preferred_element_type=jnp.float32) + bqkv_ref[0]      # (S, 3E)

    # Single head-major relayout of the packed qkv (bf16 => half the bytes),
    # then free leading-dim slices for Q/K/V.
    # TODO(synk): drop this relayout entirely with 'qhd,khd->hqk' /
    # 'hqk,khd->qhd' orderings once Mosaic dot_general supports non-leading
    # batch dims; leading-batch einsums below are the known-good pattern.
    qkv_h = jnp.transpose(qkv.astype(jnp.bfloat16).reshape(S, 3 * H, Dh),
                          (1, 0, 2))                                     # (3H, S, Dh)
    q = qkv_h[:H]                                # (H, S, Dh), scale pre-folded
    k = qkv_h[H:2 * H]                           # (H, S, Dh)
    v = qkv_h[2 * H:]                            # (H, S, Dh)

    # Causal additive bias built once (finite large-negative => bf16/f32 safe),
    # broadcast across heads.
    row = lax.broadcasted_iota(jnp.int32, (S, S), 0)
    col = lax.broadcasted_iota(jnp.int32, (S, S), 1)
    mask_bias = jnp.where(col > row, jnp.float32(-1e30), jnp.float32(0.0))

    # ---- batched attention: all heads in one MXU einsum pair (f32 scores).
    s = jnp.einsum('hqd,hkd->hqk', q, k,
                   preferred_element_type=jnp.float32)                  # (H, S, S)
    s = s + mask_bias[None, :, :]
    s = s - jnp.max(s, axis=-1, keepdims=True)
    p = jnp.exp(s)
    denom = jnp.sum(p, axis=-1, keepdims=True)                          # (H, S, 1)
    ctx = jnp.einsum('hqk,hkd->hqd', p.astype(jnp.bfloat16), v,
                     preferred_element_type=jnp.float32)                # (H, S, Dh)
    # Normalize after PV: (H,S,Dh) multiply instead of (H,S,S); EUP reciprocal.
    ctx = ctx * pl.reciprocal(denom, approx=True)
    attn = jnp.transpose(ctx.astype(jnp.bfloat16), (1, 0, 2)).reshape(S, E)

    # ---- output projection + residual + LayerNorm (f32).
    attn = jnp.dot(attn, wo_ref[...],
                   preferred_element_type=jnp.float32) + bo_ref[0]
    a1 = _layernorm(x + attn, ln1w_ref[0], ln1b_ref[0])

    # ---- FFN: Linear(E,4E) -> GELU -> Linear(4E,E); bf16 matmuls, f32 rest.
    h1 = jnp.dot(a1.astype(jnp.bfloat16), w1_ref[...],
                 preferred_element_type=jnp.float32) + b1_ref[0]        # (S, 4E)
    g = jax.nn.gelu(h1, approximate=approx_gelu)
    h2 = jnp.dot(g.astype(jnp.bfloat16), w2_ref[...],
                 preferred_element_type=jnp.float32) + b2_ref[0]        # (S, E)
    a2 = _layernorm(a1 + h2, ln2w_ref[0], ln2b_ref[0])

    o_ref[...] = a2.astype(o_ref.dtype)


def _vmem_limit_bytes(S, E, H):
    """Residency-based VMEM budget, clamped to the actual chip's capacity."""
    w_bytes = 12 * E * E * 2                       # bf16 weights (qkv, o, w1, w2)
    small = (3 * E + E + 4 * E + E + 4 * E) * 4    # biases + LN params (f32)
    io_tiles = 2 * S * E * 4                       # x block + out block (f32)
    acts = (3 * S * E * (4 + 2 + 2)                # qkv f32 + bf16 + relayout copy
            + H * S * S * (4 + 4 + 2)              # scores, p, p_bf16
            + H * S * (E // H) * (4 + 2)           # ctx f32 + bf16
            + S * E * (4 + 4 + 4)                  # attn_out, residual, a1
            + S * 4 * E * (4 + 4 + 2)              # h1, gelu, gelu_bf16
            + S * E * (4 + 4))                     # h2, a2
    # x2: default double-buffered pipeline buffers for all grid inputs/outputs.
    need = 2 * (w_bytes + small + io_tiles) + acts
    need = int(need * 1.5) + (4 << 20)             # headroom for compiler scratch
    try:
        cap = int(pltpu.get_tpu_info().vmem_capacity_bytes)
    except Exception:
        cap = 64 << 20                             # v7x per-TC VMEM (safe floor)
    return max(32 << 20, min(need, int(cap * 0.9)))


def decoder_block_pallas(x_bse, params, n_heads, *, approx_gelu=True):
    """x_bse: (B, S, E).  params: 12 arrays in PyTorch layout (see __main__)."""
    (wqkv, bqkv, wo, bo, ln1w, ln1b, w1, b1, w2, b2, ln2w, ln2b) = params
    B, S, E = x_bse.shape
    assert E % n_heads == 0
    scale = 1.0 / float(E // n_heads) ** 0.5

    # One-time weight prep (wrapper-side, not per-element activation work):
    #   * transpose to (K, N) so every in-kernel matmul is MXU-native,
    #   * fold the 1/sqrt(Dh) query scale into the Q columns of the in-proj,
    #   * cast to bf16 (MXU-native; halves weight VMEM and HBM DMA).
    wqkv_t = wqkv.T.at[:, :E].multiply(scale).astype(jnp.bfloat16)   # (E, 3E)
    bqkv_s = bqkv.at[:, :E].multiply(scale).astype(jnp.float32)      # (1, 3E)
    wo_t = wo.T.astype(jnp.bfloat16)                                 # (E, E)
    w1_t = w1.T.astype(jnp.bfloat16)                                 # (E, 4E)
    w2_t = w2.T.astype(jnp.bfloat16)                                 # (4E, E)

    kernel = functools.partial(decoder_block_kernel, n_heads=n_heads,
                               approx_gelu=approx_gelu)

    def full(shape):
        nd = len(shape)
        return pl.BlockSpec(shape, lambda b, _nd=nd: (0,) * _nd)

    # NOTE: the weight/LN specs are grid-invariant (constant index_map), so
    # their tiles are DMA'd only once; pipeline_mode=pl.Buffered(1) would also
    # halve their buffer allocation.  TODO(synk): enable single-buffering for
    # these specs (and fp8 FFN weights on v7x) when moving to large E.
    in_specs = [
        pl.BlockSpec((None, S, E), lambda b: (b, 0, 0)),   # x (batch squeezed)
        full((E, 3 * E)), full((1, 3 * E)),                # in_proj W^T (scaled), b
        full((E, E)),     full((1, E)),                    # out_proj W^T, b
        full((1, E)),     full((1, E)),                    # ln1 w, b
        full((E, 4 * E)), full((1, 4 * E)),                # ffn W1^T, b1
        full((4 * E, E)), full((1, E)),                    # ffn W2^T, b2
        full((1, E)),     full((1, E)),                    # ln2 w, b
    ]

    return pl.pallas_call(
        kernel,
        out_shape=jax.ShapeDtypeStruct((B, S, E), x_bse.dtype),
        grid_spec=pltpu.PrefetchScalarGridSpec(
            num_scalar_prefetch=0,
            grid=(B,),
            in_specs=in_specs,
            out_specs=pl.BlockSpec((None, S, E), lambda b: (b, 0, 0)),
        ),
        compiler_params=pltpu.CompilerParams(
            dimension_semantics=("parallel",),     # batch items are independent
            vmem_limit_bytes=_vmem_limit_bytes(S, E, n_heads),
        ),
    )(x_bse, wqkv_t, bqkv_s, wo_t, bo, ln1w, ln1b, w1_t, b1, w2_t, b2,
      ln2w, ln2b)


def decoder_block_ref(x_bse, params, n_heads):
    """Plain-JAX f32 reference with PyTorch semantics (exact-erf GELU)."""
    (wqkv, bqkv, wo, bo, ln1w, ln1b, w1, b1, w2, b2, ln2w, ln2b) = params
    B, S, E = x_bse.shape
    Dh = E // n_heads
    qkv = x_bse @ wqkv.T + bqkv[0]
    q, k, v = qkv[..., :E], qkv[..., E:2 * E], qkv[..., 2 * E:]

    def split(t):  # (B,S,E) -> (B,H,S,Dh)
        return t.reshape(B, S, n_heads, Dh).transpose(0, 2, 1, 3)

    q, k, v = split(q) / (Dh ** 0.5), split(k), split(v)
    s = jnp.einsum('bhqd,bhkd->bhqk', q, k)
    mask = jnp.triu(jnp.full((S, S), -jnp.inf), k=1)
    s = s + mask
    p = jax.nn.softmax(s, axis=-1)
    o = jnp.einsum('bhqk,bhkd->bhqd', p, v).transpose(0, 2, 1, 3).reshape(B, S, E)
    o = o @ wo.T + bo[0]

    def ln(t, w, b):
        mu = jnp.mean(t, axis=-1, keepdims=True)
        var = jnp.mean((t - mu) ** 2, axis=-1, keepdims=True)
        return (t - mu) / jnp.sqrt(var + 1e-5) * w[0] + b[0]

    a1 = ln(x_bse + o, ln1w, ln1b)
    h = jax.nn.gelu(a1 @ w1.T + b1[0], approximate=False)
    a2 = ln(a1 + (h @ w2.T + b2[0]), ln2w, ln2b)
    return a2


if __name__ == "__main__":
    # Small but lane/sublane-friendly shapes: E = 128 (one lane width),
    # S = 16 (sublane-aligned for bf16 packing), per the shape contract.
    dim_model, n_heads, seq, batch = 128, 4, 16, 2
    key = jax.random.PRNGKey(0)
    keys = jax.random.split(key, 10)

    # x in PyTorch layout (S, B, E), then move to kernel layout (B, S, E).
    x_sbe = jax.random.normal(keys[0], (seq, batch, dim_model), jnp.float32)
    x_bse = jnp.transpose(x_sbe, (1, 0, 2))

    E = dim_model
    wqkv = 0.05 * jax.random.normal(keys[1], (3 * E, E), jnp.float32)
    bqkv = 0.05 * jax.random.normal(keys[2], (1, 3 * E), jnp.float32)
    wo = 0.05 * jax.random.normal(keys[3], (E, E), jnp.float32)
    bo = 0.05 * jax.random.normal(keys[4], (1, E), jnp.float32)
    ln1w = jnp.ones((1, E), jnp.float32)
    ln1b = jnp.zeros((1, E), jnp.float32)
    w1 = 0.05 * jax.random.normal(keys[5], (4 * E, E), jnp.float32)
    b1 = 0.05 * jax.random.normal(keys[6], (1, 4 * E), jnp.float32)
    w2 = 0.05 * jax.random.normal(keys[7], (E, 4 * E), jnp.float32)
    b2 = 0.05 * jax.random.normal(keys[8], (1, E), jnp.float32)
    ln2w = jnp.ones((1, E), jnp.float32)
    ln2b = jnp.zeros((1, E), jnp.float32)

    params = (wqkv, bqkv, wo, bo, ln1w, ln1b, w1, b1, w2, b2, ln2w, ln2b)

    out = decoder_block_pallas(x_bse, params, n_heads)
    out = jax.block_until_ready(out)

    ref = decoder_block_ref(x_bse, params, n_heads)
    assert out.shape == (batch, seq, dim_model)
    # Tolerance deliberately loosened (and documented) for: bf16 matmul
    # operands, EUP approximate reciprocal (~1e-4 rel), and tanh-GELU vs
    # exact erf (<~1e-3 abs).  Real layout/mask bugs would give O(1) errors.
    assert jnp.allclose(out, ref, atol=3e-2, rtol=3e-2), (
        f"max err {jnp.max(jnp.abs(out - ref))}")

    print("KERNEL_OK")
</pallas_src>

<mosaic_0001>
module attributes {stable_mosaic.version = 11 : i64} {
  func.func @decoder_block_kernel(%arg0: i32, %arg1: memref<1x16x128xf32, #tpu.memory_space<vmem>>, %arg2: memref<128x384xbf16, #tpu.memory_space<vmem>>, %arg3: memref<1x384xf32, #tpu.memory_space<vmem>>, %arg4: memref<128x128xbf16, #tpu.memory_space<vmem>>, %arg5: memref<1x128xf32, #tpu.memory_space<vmem>>, %arg6: memref<1x128xf32, #tpu.memory_space<vmem>>, %arg7: memref<1x128xf32, #tpu.memory_space<vmem>>, %arg8: memref<128x512xbf16, #tpu.memory_space<vmem>>, %arg9: memref<1x512xf32, #tpu.memory_space<vmem>>, %arg10: memref<512x128xbf16, #tpu.memory_space<vmem>>, %arg11: memref<1x128xf32, #tpu.memory_space<vmem>>, %arg12: memref<1x128xf32, #tpu.memory_space<vmem>>, %arg13: memref<1x128xf32, #tpu.memory_space<vmem>>, %arg14: memref<1x16x128xf32, #tpu.memory_space<vmem>>) attributes {dimension_semantics = [#tpu.dimension_semantics<parallel>], iteration_bounds = array<i64: 2>, scalar_prefetch = 0 : i64, scratch_operands = 0 : i64, tpu.core_type = #tpu.core_type<tc>, window_params = [{transform_indices = @transform_0, window_bounds = array<i64: 1, 16, 128>}, {pipeline_mode = #tpu.pipeline_mode<synchronous>, transform_indices = @transform_1, window_bounds = array<i64: 128, 384>}, {pipeline_mode = #tpu.pipeline_mode<synchronous>, transform_indices = @transform_2, window_bounds = array<i64: 1, 384>}, {pipeline_mode = #tpu.pipeline_mode<synchronous>, transform_indices = @transform_3, window_bounds = array<i64: 128, 128>}, {pipeline_mode = #tpu.pipeline_mode<synchronous>, transform_indices = @transform_4, window_bounds = array<i64: 1, 128>}, {pipeline_mode = #tpu.pipeline_mode<synchronous>, transform_indices = @transform_5, window_bounds = array<i64: 1, 128>}, {pipeline_mode = #tpu.pipeline_mode<synchronous>, transform_indices = @transform_6, window_bounds = array<i64: 1, 128>}, {pipeline_mode = #tpu.pipeline_mode<synchronous>, transform_indices = @transform_7, window_bounds = array<i64: 128, 512>}, {pipeline_mode = #tpu.pipeline_mode<synchronous>, transform_indices = @transform_8, window_bounds = array<i64: 1, 512>}, {pipeline_mode = #tpu.pipeline_mode<synchronous>, transform_indices = @transform_9, window_bounds = array<i64: 512, 128>}, {pipeline_mode = #tpu.pipeline_mode<synchronous>, transform_indices = @transform_10, window_bounds = array<i64: 1, 128>}, {pipeline_mode = #tpu.pipeline_mode<synchronous>, transform_indices = @transform_11, window_bounds = array<i64: 1, 128>}, {pipeline_mode = #tpu.pipeline_mode<synchronous>, transform_indices = @transform_12, window_bounds = array<i64: 1, 128>}, {transform_indices = @transform_13, window_bounds = array<i64: 1, 16, 128>}]} {
    %c0 = arith.constant 0 : index
    %c0_0 = arith.constant 0 : index
    %c0_1 = arith.constant 0 : index
    %0 = vector.load %arg1[%c0, %c0_0, %c0_1] : memref<1x16x128xf32, #tpu.memory_space<vmem>>, vector<1x16x128xf32>
    %1 = vector.shape_cast %0 : vector<1x16x128xf32> to vector<16x128xf32>
    %2 = arith.truncf %1 : vector<16x128xf32> to vector<16x128xbf16>
    %c0_2 = arith.constant 0 : index
    %c0_3 = arith.constant 0 : index
    %3 = vector.load %arg2[%c0_2, %c0_3] : memref<128x384xbf16, #tpu.memory_space<vmem>>, vector<128x384xbf16>
    %cst = arith.constant dense<0.000000e+00> : vector<16x384xf32>
    %4 = tpu.matmul %2, %3, %cst {dimension_numbers = #tpu.dot_dimension_numbers<[1], [0], [0], [1], [0, 0, 1, 1], [], []>} : vector<16x128xbf16>, vector<128x384xbf16>, vector<16x384xf32> -> vector<16x384xf32>
    %c0_4 = arith.constant 0 : index
    %c0_5 = arith.constant 0 : index
    %5 = vector.load %arg3[%c0_4, %c0_5] : memref<1x384xf32, #tpu.memory_space<vmem>>, vector<1x384xf32>
    %6 = vector.shape_cast %5 : vector<1x384xf32> to vector<384xf32>
    %7 = vector.shape_cast %6 : vector<384xf32> to vector<1x384xf32>
    %8 = vector.broadcast %7 : vector<1x384xf32> to vector<16x384xf32>
    %9 = arith.addf %4, %8 : vector<16x384xf32>
    %10 = arith.truncf %9 : vector<16x384xf32> to vector<16x384xbf16>
    %11 = vector.shape_cast %10 : vector<16x384xbf16> to vector<16x12x32xbf16>
    %12 = tpu.transpose %11, [1, 0, 2] : vector<16x12x32xbf16> -> vector<12x16x32xbf16>
    %13 = vector.extract_strided_slice %12 {offsets = [0, 0, 0], sizes = [4, 16, 32], strides = [1, 1, 1]} : vector<12x16x32xbf16> to vector<4x16x32xbf16>
    %14 = vector.extract_strided_slice %12 {offsets = [4, 0, 0], sizes = [4, 16, 32], strides = [1, 1, 1]} : vector<12x16x32xbf16> to vector<4x16x32xbf16>
    %15 = vector.extract_strided_slice %12 {offsets = [8, 0, 0], sizes = [4, 16, 32], strides = [1, 1, 1]} : vector<12x16x32xbf16> to vector<4x16x32xbf16>
    %16 = tpu.iota {dimensions = array<i32: 0>} : vector<16x16xi32>
    %17 = tpu.iota {dimensions = array<i32: 1>} : vector<16x16xi32>
    %18 = arith.cmpi sgt, %17, %16 : vector<16x16xi32>
    %cst_6 = arith.constant -1.000000e+30 : f32
    %cst_7 = arith.constant 0.000000e+00 : f32
    %19 = vector.broadcast %cst_6 : f32 to vector<16x16xf32>
    %20 = vector.broadcast %cst_7 : f32 to vector<16x16xf32>
    %21 = arith.select %18, %19, %20 : vector<16x16xi1>, vector<16x16xf32>
    "tpu.trace_start"() <{level = 10 : i32, message = "hqd,hkd->hqk"}> : () -> ()
    %cst_8 = arith.constant dense<0.000000e+00> : vector<4x16x16xf32>
    %22 = tpu.matmul %13, %14, %cst_8 {dimension_numbers = #tpu.dot_dimension_numbers<[2], [2], [1], [1], [0, 0, 0, 1, 1, 1], [0], [0]>} : vector<4x16x32xbf16>, vector<4x16x32xbf16>, vector<4x16x16xf32> -> vector<4x16x16xf32>
    "tpu.trace_stop"() : () -> ()
    %23 = vector.shape_cast %21 : vector<16x16xf32> to vector<1x16x16xf32>
    %24 = vector.broadcast %23 : vector<1x16x16xf32> to vector<4x16x16xf32>
    %25 = arith.addf %22, %24 : vector<4x16x16xf32>
    %cst_9 = arith.constant dense<0xFF800000> : vector<4x16xf32>
    %26 = vector.multi_reduction <maximumf>, %25, %cst_9 [2] : vector<4x16x16xf32> to vector<4x16xf32>
    %27 = vector.shape_cast %26 : vector<4x16xf32> to vector<4x16x1xf32>
    %28 = vector.broadcast %27 : vector<4x16x1xf32> to vector<4x16x16xf32>
    %29 = arith.subf %25, %28 : vector<4x16x16xf32>
    %30 = math.exp %29 : vector<4x16x16xf32>
    %cst_10 = arith.constant dense<0.000000e+00> : vector<4x16xf32>
    %31 = vector.multi_reduction <add>, %30, %cst_10 [2] : vector<4x16x16xf32> to vector<4x16xf32>
    %32 = vector.shape_cast %31 : vector<4x16xf32> to vector<4x16x1xf32>
    %33 = arith.truncf %30 : vector<4x16x16xf32> to vector<4x16x16xbf16>
    "tpu.trace_start"() <{level = 10 : i32, message = "hqk,hkd->hqd"}> : () -> ()
    %cst_11 = arith.constant dense<0.000000e+00> : vector<4x16x32xf32>
    %34 = tpu.matmul %33, %15, %cst_11 {dimension_numbers = #tpu.dot_dimension_numbers<[2], [1], [1], [2], [0, 0, 0, 1, 1, 2], [0], [0]>} : vector<4x16x16xbf16>, vector<4x16x32xbf16>, vector<4x16x32xf32> -> vector<4x16x32xf32>
    "tpu.trace_stop"() : () -> ()
    %35 = tpu.reciprocal %32 {approx = true} : vector<4x16x1xf32> -> vector<4x16x1xf32>
    %36 = vector.broadcast %35 : vector<4x16x1xf32> to vector<4x16x32xf32>
    %37 = arith.mulf %34, %36 : vector<4x16x32xf32>
    %38 = arith.truncf %37 : vector<4x16x32xf32> to vector<4x16x32xbf16>
    %39 = tpu.transpose %38, [1, 0, 2] : vector<4x16x32xbf16> -> vector<16x4x32xbf16>
    %40 = vector.shape_cast %39 : vector<16x4x32xbf16> to vector<16x128xbf16>
    %c0_12 = arith.constant 0 : index
    %c0_13 = arith.constant 0 : index
    %41 = vector.load %arg4[%c0_12, %c0_13] : memref<128x128xbf16, #tpu.memory_space<vmem>>, vector<128x128xbf16>
    %cst_14 = arith.constant dense<0.000000e+00> : vector<16x128xf32>
    %42 = tpu.matmul %40, %41, %cst_14 {dimension_numbers = #tpu.dot_dimension_numbers<[1], [0], [0], [1], [0, 0, 1, 1], [], []>} : vector<16x128xbf16>, vector<128x128xbf16>, vector<16x128xf32> -> vector<16x128xf32>
    %c0_15 = arith.constant 0 : index
    %c0_16 = arith.constant 0 : index
    %43 = vector.load %arg5[%c0_15, %c0_16] : memref<1x128xf32, #tpu.memory_space<vmem>>, vector<1x128xf32>
    %44 = vector.shape_cast %43 : vector<1x128xf32> to vector<128xf32>
    %45 = vector.shape_cast %44 : vector<128xf32> to vector<1x128xf32>
    %46 = vector.broadcast %45 : vector<1x128xf32> to vector<16x128xf32>
    %47 = arith.addf %42, %46 : vector<16x128xf32>
    %48 = arith.addf %1, %47 : vector<16x128xf32>
    %c0_17 = arith.constant 0 : index
    %c0_18 = arith.constant 0 : index
    %49 = vector.load %arg6[%c0_17, %c0_18] : memref<1x128xf32, #tpu.memory_space<vmem>>, vector<1x128xf32>
    %50 = vector.shape_cast %49 : vector<1x128xf32> to vector<128xf32>
    %c0_19 = arith.constant 0 : index
    %c0_20 = arith.constant 0 : index
    %51 = vector.load %arg7[%c0_19, %c0_20] : memref<1x128xf32, #tpu.memory_space<vmem>>, vector<1x128xf32>
    %52 = vector.shape_cast %51 : vector<1x128xf32> to vector<128xf32>
    %cst_21 = arith.constant dense<0.000000e+00> : vector<16xf32>
    %53 = vector.multi_reduction <add>, %48, %cst_21 [1] : vector<16x128xf32> to vector<16xf32>
    %54 = vector.shape_cast %53 : vector<16xf32> to vector<16x1xf32>
    %cst_22 = arith.constant 1.280000e+02 : f32
    %55 = vector.broadcast %cst_22 : f32 to vector<16x1xf32>
    %56 = arith.divf %54, %55 : vector<16x1xf32>
    %57 = vector.broadcast %56 : vector<16x1xf32> to vector<16x128xf32>
    %58 = arith.subf %48, %57 : vector<16x128xf32>
    %59 = arith.mulf %58, %58 : vector<16x128xf32>
    %cst_23 = arith.constant dense<0.000000e+00> : vector<16xf32>
    %60 = vector.multi_reduction <add>, %59, %cst_23 [1] : vector<16x128xf32> to vector<16xf32>
    %61 = vector.shape_cast %60 : vector<16xf32> to vector<16x1xf32>
    %cst_24 = arith.constant 1.280000e+02 : f32
    %62 = vector.broadcast %cst_24 : f32 to vector<16x1xf32>
    %63 = arith.divf %61, %62 : vector<16x1xf32>
    %64 = vector.broadcast %56 : vector<16x1xf32> to vector<16x128xf32>
    %65 = arith.subf %48, %64 : vector<16x128xf32>
    %cst_25 = arith.constant 9.99999974E-6 : f32
    %66 = vector.broadcast %cst_25 : f32 to vector<16x1xf32>
    %67 = arith.addf %63, %66 : vector<16x1xf32>
    %68 = math.rsqrt %67 : vector<16x1xf32>
    %69 = vector.broadcast %68 : vector<16x1xf32> to vector<16x128xf32>
    %70 = arith.mulf %65, %69 : vector<16x128xf32>
    %71 = vector.shape_cast %50 : vector<128xf32> to vector<1x128xf32>
    %72 = vector.broadcast %71 : vector<1x128xf32> to vector<16x128xf32>
    %73 = arith.mulf %70, %72 : vector<16x128xf32>
    %74 = vector.shape_cast %52 : vector<128xf32> to vector<1x128xf32>
    %75 = vector.broadcast %74 : vector<1x128xf32> to vector<16x128xf32>
    %76 = arith.addf %73, %75 : vector<16x128xf32>
    %77 = arith.truncf %76 : vector<16x128xf32> to vector<16x128xbf16>
    %c0_26 = arith.constant 0 : index
    %c0_27 = arith.constant 0 : index
    %78 = vector.load %arg8[%c0_26, %c0_27] : memref<128x512xbf16, #tpu.memory_space<vmem>>, vector<128x512xbf16>
    %cst_28 = arith.constant dense<0.000000e+00> : vector<16x512xf32>
    %79 = tpu.matmul %77, %78, %cst_28 {dimension_numbers = #tpu.dot_dimension_numbers<[1], [0], [0], [1], [0, 0, 1, 1], [], []>} : vector<16x128xbf16>, vector<128x512xbf16>, vector<16x512xf32> -> vector<16x512xf32>
    %c0_29 = arith.constant 0 : index
    %c0_30 = arith.constant 0 : index
    %80 = vector.load %arg9[%c0_29, %c0_30] : memref<1x512xf32, #tpu.memory_space<vmem>>, vector<1x512xf32>
    %81 = vector.shape_cast %80 : vector<1x512xf32> to vector<512xf32>
    %82 = vector.shape_cast %81 : vector<512xf32> to vector<1x512xf32>
    %83 = vector.broadcast %82 : vector<1x512xf32> to vector<16x512xf32>
    %84 = arith.addf %79, %83 : vector<16x512xf32>
    %85 = arith.mulf %84, %84 : vector<16x512xf32>
    %86 = arith.mulf %84, %85 : vector<16x512xf32>
    %cst_31 = arith.constant 4.471500e-02 : f32
    %87 = vector.broadcast %cst_31 : f32 to vector<16x512xf32>
    %88 = arith.mulf %87, %86 : vector<16x512xf32>
    %89 = arith.addf %84, %88 : vector<16x512xf32>
    %cst_32 = arith.constant 0.797884583 : f32
    %90 = vector.broadcast %cst_32 : f32 to vector<16x512xf32>
    %91 = arith.mulf %90, %89 : vector<16x512xf32>
    %92 = math.tanh %91 : vector<16x512xf32>
    %cst_33 = arith.constant 1.000000e+00 : f32
    %93 = vector.broadcast %cst_33 : f32 to vector<16x512xf32>
    %94 = arith.addf %93, %92 : vector<16x512xf32>
    %cst_34 = arith.constant 5.000000e-01 : f32
    %95 = vector.broadcast %cst_34 : f32 to vector<16x512xf32>
    %96 = arith.mulf %95, %94 : vector<16x512xf32>
    %97 = arith.mulf %84, %96 : vector<16x512xf32>
    %98 = arith.truncf %97 : vector<16x512xf32> to vector<16x512xbf16>
    %c0_35 = arith.constant 0 : index
    %c0_36 = arith.constant 0 : index
    %99 = vector.load %arg10[%c0_35, %c0_36] : memref<512x128xbf16, #tpu.memory_space<vmem>>, vector<512x128xbf16>
    %cst_37 = arith.constant dense<0.000000e+00> : vector<16x128xf32>
    %100 = tpu.matmul %98, %99, %cst_37 {dimension_numbers = #tpu.dot_dimension_numbers<[1], [0], [0], [1], [0, 0, 1, 1], [], []>} : vector<16x512xbf16>, vector<512x128xbf16>, vector<16x128xf32> -> vector<16x128xf32>
    %c0_38 = arith.constant 0 : index
    %c0_39 = arith.constant 0 : index
    %101 = vector.load %arg11[%c0_38, %c0_39] : memref<1x128xf32, #tpu.memory_space<vmem>>, vector<1x128xf32>
    %102 = vector.shape_cast %101 : vector<1x128xf32> to vector<128xf32>
    %103 = vector.shape_cast %102 : vector<128xf32> to vector<1x128xf32>
    %104 = vector.broadcast %103 : vector<1x128xf32> to vector<16x128xf32>
    %105 = arith.addf %100, %104 : vector<16x128xf32>
    %106 = arith.addf %76, %105 : vector<16x128xf32>
    %c0_40 = arith.constant 0 : index
    %c0_41 = arith.constant 0 : index
    %107 = vector.load %arg12[%c0_40, %c0_41] : memref<1x128xf32, #tpu.memory_space<vmem>>, vector<1x128xf32>
    %108 = vector.shape_cast %107 : vector<1x128xf32> to vector<128xf32>
    %c0_42 = arith.constant 0 : index
    %c0_43 = arith.constant 0 : index
    %109 = vector.load %arg13[%c0_42, %c0_43] : memref<1x128xf32, #tpu.memory_space<vmem>>, vector<1x128xf32>
    %110 = vector.shape_cast %109 : vector<1x128xf32> to vector<128xf32>
    %cst_44 = arith.constant dense<0.000000e+00> : vector<16xf32>
    %111 = vector.multi_reduction <add>, %106, %cst_44 [1] : vector<16x128xf32> to vector<16xf32>
    %112 = vector.shape_cast %111 : vector<16xf32> to vector<16x1xf32>
    %cst_45 = arith.constant 1.280000e+02 : f32
    %113 = vector.broadcast %cst_45 : f32 to vector<16x1xf32>
    %114 = arith.divf %112, %113 : vector<16x1xf32>
    %115 = vector.broadcast %114 : vector<16x1xf32> to vector<16x128xf32>
    %116 = arith.subf %106, %115 : vector<16x128xf32>
    %117 = arith.mulf %116, %116 : vector<16x128xf32>
    %cst_46 = arith.constant dense<0.000000e+00> : vector<16xf32>
    %118 = vector.multi_reduction <add>, %117, %cst_46 [1] : vector<16x128xf32> to vector<16xf32>
    %119 = vector.shape_cast %118 : vector<16xf32> to vector<16x1xf32>
    %cst_47 = arith.constant 1.280000e+02 : f32
    %120 = vector.broadcast %cst_47 : f32 to vector<16x1xf32>
    %121 = arith.divf %119, %120 : vector<16x1xf32>
    %122 = vector.broadcast %114 : vector<16x1xf32> to vector<16x128xf32>
    %123 = arith.subf %106, %122 : vector<16x128xf32>
    %cst_48 = arith.constant 9.99999974E-6 : f32
    %124 = vector.broadcast %cst_48 : f32 to vector<16x1xf32>
    %125 = arith.addf %121, %124 : vector<16x1xf32>
    %126 = math.rsqrt %125 : vector<16x1xf32>
    %127 = vector.broadcast %126 : vector<16x1xf32> to vector<16x128xf32>
    %128 = arith.mulf %123, %127 : vector<16x128xf32>
    %129 = vector.shape_cast %108 : vector<128xf32> to vector<1x128xf32>
    %130 = vector.broadcast %129 : vector<1x128xf32> to vector<16x128xf32>
    %131 = arith.mulf %128, %130 : vector<16x128xf32>
    %132 = vector.shape_cast %110 : vector<128xf32> to vector<1x128xf32>
    %133 = vector.broadcast %132 : vector<1x128xf32> to vector<16x128xf32>
    %134 = arith.addf %131, %133 : vector<16x128xf32>
    %c0_49 = arith.constant 0 : index
    %c0_50 = arith.constant 0 : index
    %c0_51 = arith.constant 0 : index
    %135 = vector.load %arg14[%c0_49, %c0_50, %c0_51] : memref<1x16x128xf32, #tpu.memory_space<vmem>>, vector<1x16x128xf32>
    %136 = vector.shape_cast %135 : vector<1x16x128xf32> to vector<16x128xf32>
    %137 = vector.shape_cast %134 : vector<16x128xf32> to vector<1x16x128xf32>
    tpu.vector_store %arg14[%c0_49, %c0_50, %c0_51], %137 {strides = array<i32>} : memref<1x16x128xf32, #tpu.memory_space<vmem>>, vector<1x16x128xf32>,
    return
  }
  func.func @transform_0(%arg0: i32) -> (i32, i32, i32) {
    %c0_i32 = arith.constant 0 : i32
    %c0_i32_0 = arith.constant 0 : i32
    %c0_i32_1 = arith.constant 0 : i32
    return %arg0, %c0_i32, %c0_i32_0 : i32, i32, i32
  }
  func.func @transform_1(%arg0: i32) -> (i32, i32) {
    %c0_i32 = arith.constant 0 : i32
    %c0_i32_0 = arith.constant 0 : i32
    %c0_i32_1 = arith.constant 0 : i32
    return %c0_i32, %c0_i32_0 : i32, i32
  }
  func.func @transform_2(%arg0: i32) -> (i32, i32) {
    %c0_i32 = arith.constant 0 : i32
    %c0_i32_0 = arith.constant 0 : i32
    %c0_i32_1 = arith.constant 0 : i32
    return %c0_i32, %c0_i32_0 : i32, i32
  }
  func.func @transform_3(%arg0: i32) -> (i32, i32) {
    %c0_i32 = arith.constant 0 : i32
    %c0_i32_0 = arith.constant 0 : i32
    %c0_i32_1 = arith.constant 0 : i32
    return %c0_i32, %c0_i32_0 : i32, i32
  }
  func.func @transform_4(%arg0: i32) -> (i32, i32) {
    %c0_i32 = arith.constant 0 : i32
    %c0_i32_0 = arith.constant 0 : i32
    %c0_i32_1 = arith.constant 0 : i32
    return %c0_i32, %c0_i32_0 : i32, i32
  }
  func.func @transform_5(%arg0: i32) -> (i32, i32) {
    %c0_i32 = arith.constant 0 : i32
    %c0_i32_0 = arith.constant 0 : i32
    %c0_i32_1 = arith.constant 0 : i32
    return %c0_i32, %c0_i32_0 : i32, i32
  }
  func.func @transform_6(%arg0: i32) -> (i32, i32) {
    %c0_i32 = arith.constant 0 : i32
    %c0_i32_0 = arith.constant 0 : i32
    %c0_i32_1 = arith.constant 0 : i32
    return %c0_i32, %c0_i32_0 : i32, i32
  }
  func.func @transform_7(%arg0: i32) -> (i32, i32) {
    %c0_i32 = arith.constant 0 : i32
    %c0_i32_0 = arith.constant 0 : i32
    %c0_i32_1 = arith.constant 0 : i32
    return %c0_i32, %c0_i32_0 : i32, i32
  }
  func.func @transform_8(%arg0: i32) -> (i32, i32) {
    %c0_i32 = arith.constant 0 : i32
    %c0_i32_0 = arith.constant 0 : i32
    %c0_i32_1 = arith.constant 0 : i32
    return %c0_i32, %c0_i32_0 : i32, i32
  }
  func.func @transform_9(%arg0: i32) -> (i32, i32) {
    %c0_i32 = arith.constant 0 : i32
    %c0_i32_0 = arith.constant 0 : i32
    %c0_i32_1 = arith.constant 0 : i32
    return %c0_i32, %c0_i32_0 : i32, i32
  }
  func.func @transform_10(%arg0: i32) -> (i32, i32) {
    %c0_i32 = arith.constant 0 : i32
    %c0_i32_0 = arith.constant 0 : i32
    %c0_i32_1 = arith.constant 0 : i32
    return %c0_i32, %c0_i32_0 : i32, i32
  }
  func.func @transform_11(%arg0: i32) -> (i32, i32) {
    %c0_i32 = arith.constant 0 : i32
    %c0_i32_0 = arith.constant 0 : i32
    %c0_i32_1 = arith.constant 0 : i32
    return %c0_i32, %c0_i32_0 : i32, i32
  }
  func.func @transform_12(%arg0: i32) -> (i32, i32) {
    %c0_i32 = arith.constant 0 : i32
    %c0_i32_0 = arith.constant 0 : i32
    %c0_i32_1 = arith.constant 0 : i32
    return %c0_i32, %c0_i32_0 : i32, i32
  }
  func.func @transform_13(%arg0: i32) -> (i32, i32, i32) {
    %c0_i32 = arith.constant 0 : i32
    %c0_i32_0 = arith.constant 0 : i32
    %c0_i32_1 = arith.constant 0 : i32
    return %arg0, %c0_i32, %c0_i32_0 : i32, i32, i32
  }
}

</mosaic_0001>

<bundles_post_ra>
// kernel: tpu_custom_call.1
= control target key start
LH: loop header
LB: loop body
LE: loop exit
PB: predicated region body
PF: predicated region fallthrough
CT: control target
= control target key end

     0   :  { %s4740_s0 = inlined_call_operand.hbm [shape: f32[2,16,128], index: 0, kind: input, shape index: {}]   ;;  %s4741_s1 = inlined_call_operand.hbm [shape: bf16[128,384], index: 1, kind: input, shape index: {}]   ;;  %s4742_s2 = inlined_call_operand.vmem [shape: f32[1,384], index: 2, kind: input, shape index: {}]   ;;  %s4743_s3 = inlined_call_operand.hbm [shape: bf16[128,128], index: 3, kind: input, shape index: {}]   ;;  %s4744_s4 = inlined_call_operand.hbm [shape: f32[1,128], index: 4, kind: input, shape index: {}]   ;;  %s4745_s5 = inlined_call_operand.vmem [shape: f32[1,128], index: 5, kind: input, shape index: {}]   ;;  %s4746_s6 = inlined_call_operand.vmem [shape: f32[1,128], index: 6, kind: input, shape index: {}]   ;;  %s4747_s7 = inlined_call_operand.hbm [shape: bf16[128,512], index: 7, kind: input, shape index: {}]   ;;  %s4748_s8 = inlined_call_operand.vmem [shape: f32[1,512], index: 8, kind: input, shape index: {}]   ;;  %s4749_s9 = inlined_call_operand.hbm [shape: bf16[512,128], index: 9, kind: input, shape index: {}]   ;;  %s4750_s10 = inlined_call_operand.vmem [shape: f32[1,128], index: 10, kind: input, shape index: {}]   ;;  %s4751_s11 = inlined_call_operand.vmem [shape: f32[1,128], index: 11, kind: input, shape index: {}]   ;;  %s4752_s12 = inlined_call_operand.vmem [shape: f32[1,128], index: 12, kind: input, shape index: {}]   ;;  %s4753_s13 = inlined_call_operand.hbm [shape: f32[2,16,128], index: 13, kind: output, shape index: {}]  }
   0x1   :  { %4759 = sst [smem:[#allocation19_spill]] %s4741_s1 }
   0x2   :  { %4760 = sst [smem:[#allocation20_spill]] %s4743_s3 }
   0x3   :  { %4761 = sst [smem:[#allocation21_spill]] %s4744_s4 }
   0x4   :  { %4762 = sst [smem:[#allocation22_spill]] %s4747_s7 }
   0x5   :  { %4763 = sst [smem:[#allocation23_spill]] %s4749_s9 }
   0x6   :  { %4764 = sst [smem:[#allocation24_spill]] %s4752_s12 }
   0x7   :  { %4765 = sst [smem:[#allocation25_spill]] %s4753_s13 }
   0x8   :  { %18 = vsyncpa [#allocation3], 0 }
   0x9   :  { %20 = vsyncpa [#allocation3 + $0x1], 0 }
   0xa   :  { %21 = vsyncpa [#allocation6], 0 }
   0xb   :  { %22 = vsyncpa [#allocation9], 0 }
   0xc   :  { %23 = vsyncpa [#allocation12], 0 }
   0xd   :  { %24 = vsyncpa [#allocation4], 0 }
   0xe   :  { %26 = vsyncpa [#allocation4 + $0x1], 0  ;;  %s4166_s25 = smov 0   ;;  %s4168_s26 = smov 0  }
   0xf   :  { %s4170_s27 = smov 0   ;;  %s4172_s28 = smov 0  }
  0x10 LB: > { %s4071_s29 = smov [#allocation5]   ;;  %s4187_s14 = sadd.s32 4294967295, %s4069_s28   ;;  %s4069_s28 = sphi %s4172_s28, %s4794_s28   ;;  %s4065_s27 = sphi %s4170_s27, %s4793_s27   ;;  %s4061_s26 = sphi %s4168_s26, %s4792_s26   ;;  %s4057_s25 = sphi %s4166_s25, %s4791_s25  }
  0x11   : > { %s353_s30 = sshll.u32 %s4071_s29, 4  ;;  %p3221_p0 = scmp.ge.s32.totalorder %s4069_s28, 1  ;;  %s354_s30 = int_to_ptr.vmem [resolvable:$true] %s353_s30 }
  0x12   : > { %p4755_p1 = scmp.eq.s32.totalorder %s4187_s14, 0  ;;  %p341_p2 = scmp.lt.s32.totalorder %s4069_s28, 3 }
  0x13   : > { %s4072_s16 = smov [#allocation8]   ;;  %s4073_s19 = smov [#allocation7]  }
  0x14   : > { %p4192_p3 = pnand %p3221_p0, %p341_p2  ;;  %s383_s17 = sshll.u32 %s4072_s16, 4  ;;  %s384_s17 = int_to_ptr.vmem [resolvable:$true] %s383_s17 }
  0x15   : > { %s369_s20 = sshll.u32 %s4073_s19, 4  ;;  %s3846_s22 = scalar_lea.vmem %s354_s30, 3072  ;;  %s4205_s20 = int_to_ptr.vmem [resolvable:$true] %s369_s20 }
  0x16   : > { %s4766_s15 = scalar_select %p4192_p3, 1, 0 }
  0x17   : > { %p3566_p5 = pneg %p4192_p3  ;;  %p3847_p8 = scmp.ne.s32.totalorder %s354_s30, %s3846_s22 }
  0x18   : > { %p3854_p11 = scmp.lt.s32.totalorder %s354_s30, %s354_s30  ;;  %p3855_p12 = scmp.lt.s32.totalorder %s3846_s22, %s3846_s22 }
  0x19   : > { %p4201_p6 = pnand %p3566_p5, %p4755_p1 }
  0x1a   : > { %p3856_p13 = por %p3855_p12, %p3854_p11 }
  0x1b   : > { %p4209_p7 = pneg %p4201_p6 }
  0x1d   : > { %p3849_p9 = pnand %p3847_p8, %p4209_p7 }
  0x1f   : > { %p3850_p10 = pneg %p3849_p9 }
  0x21   : > { %p3857_p0 = pnand %p3856_p13, %p3850_p10 }
  0x23   : > { %3860 = shalt.err (!%p3857_p0)
}
  0x24   : > { %s4074_s23 = smov 192   ;;  %s4075_s24 = smov 12  }
  0x25   : > { %s4769_s1 = sld [smem:[#allocation19_spill]]  ;;  %s3872_s19 = scalar_lea.vmem %s384_s17, 16 }
  0x26   : > { %p3873_p2 = scmp.ne.s32.totalorder %s384_s17, %s3872_s19  ;;  %s3879_s13 = scalar_lea.vmem %s384_s17, 32 }
  0x27   : > { %p3880_p9 = scmp.lt.s32.totalorder %s384_s17, %s384_s17  ;;  %p3881_p4 = scmp.lt.s32.totalorder %s3879_s13, %s3872_s19 }
  0x28   : > { %p3875_p5 = pnand %p3873_p2, %p4209_p7 }
  0x29   : > { %p3882_p11 = por %p3881_p4, %p3880_p9 }
  0x2a   : > { %p3876_p8 = pneg %p3875_p5 }
  0x2b   : > { %3569 = dma.hbm_to_vmem [thread:$0]  (!%p4201_p6), %s4769_s1, 3072, %s354_s30, [#allocation6], %s4074_s23, %s4074_s23, %s4075_s24  }
  0x2c   : > { %p3883_p10 = pnand %p3882_p11, %p3876_p8 }
  0x2e   : > { %3886 = shalt.err (!%p3883_p10)
}
  0x2f   : > { %s4770_s4 = sld [smem:[#allocation21_spill]]  ;;  %s3898_s30 = scalar_lea.vmem %s4205_s20, 1024 }
  0x30   : > { %p3899_p12 = scmp.ne.s32.totalorder %s4205_s20, %s3898_s30  ;;  %p3906_p2 = scmp.lt.s32.totalorder %s4205_s20, %s4205_s20 }
  0x31   : > { %p3907_p4 = scmp.lt.s32.totalorder %s3898_s30, %s3898_s30 }
  0x32   : > { %p3901_p13 = pnand %p3899_p12, %p4209_p7 }
  0x33   : > { %p3908_p5 = por %p3907_p4, %p3906_p2 }
  0x34   : > { %p3902_p0 = pneg %p3901_p13 }
  0x35   : > { %3575 = dma.hbm_to_vmem [thread:$0]  (!%p4201_p6), %s4770_s4, 16, %s384_s17, [#allocation9]  }
  0x36   : > { %p3909_p8 = pnand %p3908_p5, %p3902_p0 }
  0x38   : > { %3912 = shalt.err (!%p3909_p8)
}
  0x39   : > { %s4076_s13 = smov 64   ;;  %s4077_s12 = smov 4  }
  0x3a   : > { %s4771_s3 = sld [smem:[#allocation20_spill]]  ;;  %s4078_s24 = smov [#allocation10]  }
  0x3b   : > { %s399_s29 = sshll.u32 %s4078_s24, 4  ;;  %s400_s29 = int_to_ptr.vmem [resolvable:$true] %s399_s29 }
  0x3c   : > { %s3924_s16 = scalar_lea.vmem %s400_s29, 4096  ;;  %p3932_p12 = scmp.lt.s32.totalorder %s400_s29, %s400_s29 }
  0x3d   : > { %p3925_p9 = scmp.ne.s32.totalorder %s400_s29, %s3924_s16  ;;  %p3933_p13 = scmp.lt.s32.totalorder %s3924_s16, %s3924_s16 }
  0x3f   : > { %p3927_p11 = pnand %p3925_p9, %p4209_p7  ;;  %p3934_p0 = por %p3933_p13, %p3932_p12 }
  0x40   : > { %3572 = dma.hbm_to_vmem [thread:$0]  (!%p4201_p6), %s4771_s3, 1024, %s4205_s20, [#allocation6], %s4076_s13, %s4076_s13, %s4077_s12  }
  0x41   : > { %p3928_p10 = pneg %p3927_p11 }
  0x43   : > { %p3935_p2 = pnand %p3934_p0, %p3928_p10 }
  0x45   : > { %3938 = shalt.err (!%p3935_p2)
}
  0x46   : > { %s4079_s19 = smov 256   ;;  %s4080_s22 = smov 16  }
  0x47   : > { %s4772_s7 = sld [smem:[#allocation22_spill]]  ;;  %s4081_s17 = smov [#allocation11]  }
  0x48   : > { %s415_s23 = sshll.u32 %s4081_s17, 4  ;;  %s416_s23 = int_to_ptr.vmem [resolvable:$true] %s415_s23 }
  0x49   : > { %s3950_s24 = scalar_lea.vmem %s416_s23, 4096  ;;  %p3958_p9 = scmp.lt.s32.totalorder %s416_s23, %s416_s23 }
  0x4a   : > { %p3951_p4 = scmp.ne.s32.totalorder %s416_s23, %s3950_s24  ;;  %p3959_p11 = scmp.lt.s32.totalorder %s3950_s24, %s3950_s24 }
  0x4c   : > { %p3953_p5 = pnand %p3951_p4, %p4209_p7  ;;  %p3960_p10 = por %p3959_p11, %p3958_p9 }
  0x4d   : > { %3578 = dma.hbm_to_vmem [thread:$0]  (!%p4201_p6), %s4772_s7, 4096, %s400_s29, [#allocation9], %s4079_s19, %s4079_s19, %s4080_s22  }
  0x4e   : > { %p3954_p8 = pneg %p3953_p5 }
  0x50   : > { %p3961_p12 = pnand %p3960_p10, %p3954_p8 }
  0x52   : > { %3964 = shalt.err (!%p3961_p12)
}
  0x53   : > { %s4773_s9 = sld [smem:[#allocation23_spill]]  ;;  %s3220_s18 = sadd.s32 4294967294, %s4069_s28  }
  0x54   : > { %s4261_s21 = sadd.s32 1, %s4069_s28   ;;  %s39_s19 = sadd.s32 1, %s4065_s27 }
  0x55   : > { %s36_s22 = ssub.s32 %s4069_s28, %s4261_s21  ;;  %p46_p7 = scmp.ne.s32.totalorder %s4065_s27, %s4061_s26 }
  0x56   : > { %p37_p13 = scmp.eq.s32.totalorder %s36_s22, 0  ;;  %p47_p0 = scmp.eq.s32.totalorder %s4069_s28, 0 }
  0x57   : > { %p52_p2 = scmp.ne.s32.totalorder %s4061_s26, %s4057_s25  ;;  %p328_p4 = scmp.eq.s32.totalorder %s4187_s14, 1 }
  0x58   : > { %s4273_s30 = scalar_select %p37_p13, %s4065_s27, %s39_s19  }
  0x59   : > { %3581 = dma.hbm_to_vmem [thread:$0]  (!%p4201_p6), %s4773_s9, 4096, %s416_s23, [#allocation12], %s4076_s13, %s4076_s13, %s4077_s12  }
  0x5a   : > { %p48_p5 = por %p47_p0, %p46_p7  ;;  %p4277_p8 = por %p4755_p1, %p52_p2 }
  0x5b   : > { %p4281_p6 = por %p328_p4, %p46_p7  ;;  %p334_p9 = scmp.eq.s32.totalorder %s3220_s18, 1 }
  0x5c   : > { %s4774_s20 = scalar_select %p4277_p8, 1, 0 }
  0x5d   : > { %s4775_s13 = scalar_select %p4281_p6, 1, 0 }
  0x5e   : > { %p3595_p11 = scmp.lt.s32.totalorder %s4069_s28, 2  ;;  %s438_s12 = sand.u32 1, %s4065_s27  }
  0x5f   : > { %p4287_p10 = por %p334_p9, %p52_p2  ;;  %s3228_s23 = sshll.u32 %s438_s12, 4 }
  0x60   : > { %s3374_s24 = sshll.u32 %s4069_s28, 8  ;;  %s442_s22 = scalar_lea.vmem [#allocation2], %s3228_s23 }
  0x61   : > { %s4776_s17 = scalar_select %p4287_p10, 1, 0 }
  0x62   : > { %s4295_s19 = scalar_lea.hbm %s4740_s0, %s3374_s24  ;;  %s449_s1 = sshll.u32 %s442_s22, 4  ;;  %s4301_s1 = int_to_ptr.vmem [resolvable:$true] %s449_s1 }
  0x63   : > { %p4297_p12 = pnand %p3595_p11, %p48_p5  ;;  %s4303_s3 = scalar_lea.sflag [#allocation3], %s438_s12 }
  0x64   : > { %s3965_s4 = scalar_lea.hbm %s4295_s19, 256  ;;  %s3970_s23 = scalar_lea.hbm %s4740_s0, 512 }
  0x65   : > { %p3966_p7 = scmp.ne.s32.totalorder %s4295_s19, %s3965_s4  ;;  %p3967_p13 = pneg %p4297_p12 }
  0x66   : > { %p3971_p4 = scmp.lt.s32.totalorder %s4295_s19, %s4740_s0  ;;  %p3972_p5 = scmp.lt.s32.totalorder %s3970_s23, %s3965_s4 }
  0x67   : > { %p3968_p0 = pnand %p3967_p13, %p3966_p7 }
  0x68   : > { %p3973_p9 = por %p3972_p5, %p3971_p4 }
  0x69   : > { %p3969_p2 = pneg %p3968_p0 }
  0x6b   : > { %p3974_p11 = pnand %p3973_p9, %p3969_p2 }
  0x6d   : > { %3977 = shalt.err (!%p3974_p11)
}
  0x6e   : > { %s3978_s12 = scalar_lea.vmem %s4301_s1, 256  ;;  %s4082_s7 = smov [#allocation2]  }
  0x6f   : > { %p3979_p1 = scmp.ne.s32.totalorder %s4301_s1, %s3978_s12  ;;  %s3983_s9 = sshll.u32 %s4082_s7, 4  ;;  %s3984_s9 = int_to_ptr.vmem [resolvable:$false] %s3983_s9 }
  0x70   : > { %s3985_s24 = scalar_lea.vmem %s3984_s9, 512  ;;  %p3986_p0 = scmp.lt.s32.totalorder %s4301_s1, %s3984_s9 }
  0x71   : > { %p3981_p10 = pnand %p3979_p1, %p3967_p13  ;;  %p3987_p6 = scmp.lt.s32.totalorder %s3985_s24, %s3978_s12 }
  0x73   : > { %p3982_p7 = pneg %p3981_p10  ;;  %p3988_p8 = por %p3987_p6, %p3986_p0 }
  0x75   : > { %p3989_p3 = pnand %p3988_p8, %p3982_p7 }
  0x77   : > { %3992 = shalt.err (!%p3989_p3)
}
  0x78   : > { %s4083_s4 = smov 128   ;;  %s4084_s16 = smov 8  }
  0x79   : > { %3585 = dma.hbm_to_vmem [thread:$0]  (!%p4297_p12), %s4295_s19, 256, %s4301_s1, %s4303_s3, %s4083_s4, %s4083_s4, %s4084_s16  }
  0x7a   : > { %p4778_p1 = scmp.ne.s32.totalorder %s4766_s15, 0 }
  0x7b   : > { %s4327_s7 = sand.u32 (!%p4778_p1), 1, %s4061_s26   ;;  %p4779_p3 = scmp.ne.s32.totalorder (!%p4778_p1), %s4774_s20, 0 }
  0x7c   : > { %461 = sbr.rel (%p4778_p1) target bundleno = 2530 (0x9e2), region = 72  ;;  %s3232_s9 = sshll.u32 (!%p4778_p1), %s4327_s7, 4 }
  0x7d   : > { %s464_s23 = scalar_lea.sflag (!%p4778_p1), [#allocation3], %s4327_s7  ;;  %s4333_s29 = scalar_lea.vmem (!%p4778_p1), [#allocation2], %s3232_s9 }
  0x81   : > { %4036 = dma.done.wait (%p4779_p3), %s464_s23, 256  }
  0x82   : > { %4038 = vsyncadd (%p4779_p3), %s464_s23, 4294967040  ;;  %p4780_p8 = scmp.eq.s32.totalorder %s4187_s14, 0 }
  0x84   : > { %4040 = dma.done.wait (%p4780_p8), [#allocation6], 4096   ;;  %p4781_p6 = pmov %p4780_p8 }
  0x86   : > { %4042 = vsyncadd (%p4781_p6), [#allocation6], 4294963200  ;;  %p4782_p10 = pmov %p4781_p6 }
  0x87   : > { %p4783_p12 = pmov %p4781_p6 }
  0x88   : > { %4044 = dma.done.wait (%p4782_p10), [#allocation9], 4112  }
  0x89   : > { %4046 = vsyncadd (%p4783_p12), [#allocation9], 4294963184  ;;  %p4784_p13 = pmov %p4781_p6 }
  0x8a   : > { %p4785_p2 = pmov %p4781_p6 }
  0x8b   : > { %4048 = dma.done.wait (%p4784_p13), [#allocation12], 4096  }
  0x8c   : > { %4050 = vsyncadd (%p4785_p2), [#allocation12], 4294963200  ;;  %v4085_v0 = vmov 0   ;;  %v4086_v1 = vmov 0.0   ;;  %v3657_v2 = vld [vmem:[#allocation5 + $0xac] ss:$12 sps:$4 sm:$0xff]   ;;  %v568_v29 = vlaneseq }
  0x8d   : > { %743 = vmatprep.mubr.bf16.mxu0 %v4085_v0  ;;  %3454 = vmatprep.subr.bf16.mxu1 %v4086_v1  ;;  %v3659_v3 = vld [vmem:[#allocation5 + $0xa8] ss:$12 sps:$4 sm:$0xff]   ;;  %v3662_v5 = vld [vmem:[#allocation5 + $0x90] ss:$12 sps:$4 sm:$0xff]   ;;  %v3665_v7 = vld [vmem:[#allocation5 + $0x78] ss:$12 sps:$4 sm:$0xff]  }
  0x8e   : > { %711 = vmatprep.subr.bf16.mxu0 %v3657_v2  ;;  %v3660_v4 = vld [vmem:[#allocation5 + $0x94] ss:$12 sps:$4 sm:$0xff]   ;;  %v3663_v6 = vld [vmem:[#allocation5 + $0x7c] ss:$12 sps:$4 sm:$0xff]   ;;  %v3666_v8 = vld [vmem:[#allocation5 + $0x64] ss:$12 sps:$4 sm:$0xff]  }
  0x8f   : > { %712 = vmatpush1.bf16.msra.mxu0 %v3659_v3  ;;  %v3668_v9 = vld [vmem:[#allocation5 + $0x60] ss:$12 sps:$4 sm:$0xff]   ;;  %v3681_v11 = vld [vmem:[#allocation5 + $0xb0] ss:$12 sps:$4 sm:$0xff]   ;;  %v3682_v12 = vld [vmem:[#allocation5 + $0x98] ss:$12 sps:$4 sm:$0xff]  }
  0x90   : > { %713 = vmatprep.subr.bf16.mxu0 %v3660_v4  ;;  %v3669_v10 = vld [vmem:[#allocation5 + $0x4c] ss:$12 sps:$4 sm:$0xff]   ;;  %3455 = vmatpush3.bf16.msra.mxu1 %v3681_v11  ;;  %v3671_v13 = vld [vmem:[#allocation5 + $0x48] ss:$12 sps:$4 sm:$0xff]   ;;  %v3674_v16 = vld [vmem:[#allocation5 + $0x30] ss:$12 sps:$4 sm:$0xff]  }
  0x91   : > { %3456 = vmatprep.subr.bf16.mxu1 %v4086_v1  ;;  %v3672_v14 = vld [vmem:[#allocation5 + $0x34] ss:$12 sps:$4 sm:$0xff]   ;;  %v3675_v17 = vld [vmem:[#allocation5 + $0x1c] ss:$12 sps:$4 sm:$0xff]   ;;  %v3677_v19 = vld [vmem:[#allocation5 + $0x18] ss:$12 sps:$4 sm:$0xff]  }
  0x92   : > { %v3683_v15 = vld [vmem:[#allocation5 + $0x80] ss:$12 sps:$4 sm:$0xff]   ;;  %v3684_v18 = vld [vmem:[#allocation5 + $0x68] ss:$12 sps:$4 sm:$0xff]   ;;  %v3678_v20 = vld [vmem:[#allocation5 + $0x4] ss:$12 sps:$4 sm:$0xff]  }
  0x93   : > { %714 = vmatpush1.bf16.msra.mxu0 %v3662_v5  ;;  %v3685_v21 = vld [vmem:[#allocation5 + $0x50] ss:$12 sps:$4 sm:$0xff]   ;;  %v3680_v22 = vld [vmem:[#allocation5] ss:$12 sps:$4 sm:$0xff]   ;;  %v3686_v26 = vld [vmem:[#allocation5 + $0x38] ss:$12 sps:$4 sm:$0xff]  }
  0x94   : > { %715 = vmatprep.subr.bf16.mxu0 %v3663_v6  ;;  %3457 = vmatpush3.bf16.msra.mxu1 %v3682_v12  ;;  %v531_v23 = vld [vmem:[%s4333_s29] sm:$0xff]  ;;  %v532_v24 = vld [vmem:[%s4333_s29 + $0x8] sm:$0xff]  ;;  %vm4087_vm0 = vmmov 0   ;;  %v4371_v30 = vshrl.u32 %v568_v29, 7  ;;  %s4088_s15 = smov 32   ;;  %s4089_s20 = smov 96  }
  0x95   : > { %3458 = vmatprep.subr.bf16.mxu1 %v4086_v1  ;;  %v533_v25 = vpack.c.bf16 %v532_v24, %v531_v23  ;;  %v3687_v27 = vld [vmem:[#allocation5 + $0x20] ss:$12 sps:$4 sm:$0xff]   ;;  %v3688_v28 = vld [vmem:[#allocation5 + $0x8] ss:$12 sps:$4 sm:$0xff]   ;;  %3470 = vmatprep.mubr.msk.bf16.mxu1 %vm4087_vm0, %v4086_v1  ;;  %s4090_s19 = smov 64   ;;  %vm1426_vm1 = vcmask 261120  }
  0x96   : > { %v570_v31 = vsub.s32 0, %v4371_v30  ;;  %v566_v32 = vld [vmem:[%s4742_s2] sm:$0x7]  ;;  %v574_v35 = vsub.s32 1, %v4371_v30  ;;  %v578_v46 = vsub.s32 2, %v4371_v30  ;;  %vm1615_vm4 = vcmask 130048  }
  0x97   : > { %716 = vmatpush1.bf16.msra.mxu0 %v3665_v7  ;;  %v4091_v55 = vmov 1983009808   ;;  %v4092_v59 = vmov 1934713408   ;;  %vm2157_vm5 = vcmask 523264   ;;  %vm2160_vm6 = vcmask 785408  }
  0x98   : > { %717 = vmatprep.subr.bf16.mxu0 %v3666_v8  ;;  %3459 = vmatpush3.bf16.msra.mxu1 %v3683_v15  ;;  %v571_v34 = vrot.slane %v566_v32, %v570_v31  ;;  %v575_v39 = vrot.slane %v566_v32, %v574_v35  ;;  %v579_v47 = vrot.slane %v566_v32, %v578_v46  ;;  %v876_v56 = vunpack.c.l.s4 %v4091_v55  ;;  %s3375_s18 = sshll.u32 %s4187_s14, 8  ;;  %s529_s22 = scalar_lea.vmem [#allocation13], %s3232_s9 }
  0x99   : > { %3460 = vmatprep.subr.bf16.mxu1 %v4086_v1  ;;  %v938_v60 = vunpack.c.l.s4 %v4092_v59  ;;  %s3099_s12 = sshll.u32 %s529_s22, 4  ;;  %s4787_s16 = sld [smem:[#allocation25_spill]]  ;;  %s4697_s12 = int_to_ptr.vmem [resolvable:$true] %s3099_s12 }
  0x9a   : > { %v877_v61 = vunpack.c.0.s8 %v876_v56  ;;  %s3993_s1 = scalar_lea.vmem %s4697_s12, 256  ;;  %p4788_p5 = scmp.ne.s32.totalorder %s4775_s13, 0 }
  0x9b   : > { %718 = vmatpush1.bf16.msra.mxu0 %v3668_v9  ;;  %v939_v4 = vunpack.c.0.s8 %v938_v60  ;;  %p3994_p4 = scmp.ne.s32.totalorder %s4697_s12, %s3993_s1  ;;  %s4093_s14 = smov [#allocation13]  }
  0x9c   : > { %719 = vmatprep.subr.bf16.mxu0 %v3669_v10  ;;  %3461 = vmatpush3.bf16.msra.mxu1 %v3684_v18  ;;  %v4400_v8 = vsub.s32 %v877_v61, %v4371_v30  ;;  %s3997_s9 = sshll.u32 %s4093_s14, 4  ;;  %s3998_s9 = int_to_ptr.vmem [resolvable:$false] %s3997_s9 }
  0x9d   : > { %3462 = vmatprep.subr.bf16.mxu1 %v4086_v1  ;;  %p3995_p9 = pnand %p3994_p4, %p4788_p5  ;;  %s3999_s3 = scalar_lea.vmem %s3998_s9, 512 }
  0x9e   : > { %p4000_p7 = scmp.lt.s32.totalorder %s4697_s12, %s3998_s9  ;;  %p4001_p0 = scmp.lt.s32.totalorder %s3999_s3, %s3993_s1 }
  0x9f   : > { %720 = vmatpush1.bf16.msra.mxu0 %v3671_v13  ;;  %s4695_s23 = scalar_lea.hbm %s4787_s16, %s3375_s18  ;;  %p3996_p11 = pneg %p3995_p9 }
  0xa0   : > { %721 = vmatprep.subr.bf16.mxu0 %v3672_v14  ;;  %3463 = vmatpush3.bf16.msra.mxu1 %v3685_v21  ;;  %v4403_v21 = vsub.s32 %v939_v4, %v4371_v30  ;;  %p4002_p1 = por %p4001_p0, %p4000_p7 }
  0xa1   : > { %3464 = vmatprep.subr.bf16.mxu1 %v4086_v1 }
  0xa2   : > { %p4003_p3 = pnand %p4002_p1, %p3996_p11 }
  0xa3   : > { %722 = vmatpush1.bf16.msra.mxu0 %v3674_v16 }
  0xa4   : > { %723 = vmatprep.subr.bf16.mxu0 %v3675_v17  ;;  %3465 = vmatpush3.bf16.msra.mxu1 %v3686_v26 }
  0xa5   : > { %3466 = vmatprep.subr.bf16.mxu1 %v4086_v1 }
  0xa7   : > { %724 = vmatpush1.bf16.msra.mxu0 %v3677_v19 }
  0xa8   : > { %725 = vmatprep.subr.bf16.mxu0 %v3678_v20  ;;  %3467 = vmatpush3.bf16.msra.mxu1 %v3687_v27 }
  0xa9   : > { %3468 = vmatprep.subr.bf16.mxu1 %v4086_v1 }
  0xab   : > { %726 = vmatpush1.bf16.msra.mxu0 %v3680_v22 }
  0xac   : > { %3498 = vmatprep.subr.bf16.mxu0 %v4086_v1  ;;  %3469 = vmatpush3.bf16.msra.mxu1 %v3688_v28 }
  0xad   : > { %3474 = vmatprep.subr.bf16.mxu1 %v4086_v1 }
  0xae   : > { %744 = vmatmul.mubr.bf16.vlgmr.msra.gmra.mxu0 %v533_v25 }
  0xaf   : > { %3500 = vmatprep.mubr.msk.bf16.mxu0 %vm4087_vm0, %v4086_v1  ;;  %3471 = vmatmul.mubr.bf16.vlgmr.msra.gmra.mxu1 %v533_v25 }
  0xb0   : > { %3476 = vmatprep.mubr.msk.bf16.mxu1 %vm4087_vm0, %v4086_v1 }
 0x16e   : > { %v745_v33 = vpop.f32.mrf.mxu0 }
 0x16f   : > { %v746_v38 = vadd.f32 %v745_v33, %v571_v34  ;;  %v788_v48 = vpop.f32.mrf.mxu1 }
 0x170   : > { %v747_v36 = vpop.f32.mrf.mxu0  ;;  %v789_v50 = vadd.f32 %v788_v48, %v579_v47 }
 0x171   : > { %v748_v44 = vadd.f32 %v747_v36, %v575_v39  ;;  %v3472_v49 = vpop.f32.mrf.mxu1 }
 0x172   : > { %v749_v37 = vpop.f32.mrf.mxu0 }
 0x173   : > { %v750_v40 = vadd.f32 %v749_v37, %v571_v34  ;;  %v791_v51 = vpop.f32.mrf.mxu1 }
 0x174   : > { %v751_v41 = vpop.f32.mrf.mxu0  ;;  %v792_v52 = vadd.f32 %v791_v51, %v579_v47 }
 0x175   : > { %v795_v42 = vpack.c.bf16 %v750_v40, %v746_v38  ;;  %v752_v43 = vadd.f32 %v751_v41, %v575_v39  ;;  %v3473_v53 = vpop.f32.mrf.mxu1 }
 0x176   : > { %v4391_v54 = vpack.c.bf16 %v792_v52, %v789_v50 }
 0x177   : > { %803 = vrot.lane.b32.xlu1 %v795_v42, %s4088_s15  ;;  %799 = vrot.lane.b32.xlu0 %v795_v42, %s4089_s20  ;;  %v796_v45 = vpack.c.bf16 %v752_v43, %v748_v44  ;;  %v823_v9 = vshrl.u32 %v795_v42, 16 }
 0x179   : > { %v839_v7 = vshrl.u32 %v796_v45, 16 }
 0x17b   : > { %806 = vrot.lane.b32.xlu1 %v796_v45, %s4089_s20  ;;  %801 = vrot.lane.b32.xlu0 %v795_v42, %s4090_s19 }
 0x17f   : > { %810 = vrot.lane.b32.xlu1 %v796_v45, %s4088_s15  ;;  %808 = vrot.lane.b32.xlu0 %v796_v45, %s4090_s19 }
 0x183   : > { %813 = vrot.lane.b32.xlu1 %v4391_v54, %s4089_s20  ;;  %815 = vrot.lane.b32.xlu0 %v4391_v54, %s4090_s19 }
 0x187   : > { %817 = vrot.lane.b32.xlu1 %v4391_v54, %s4088_s15 }
 0x1e9   : > { %v804_v57 = vpop.permute.xlu1 %803  ;;  %v800_v58 = vpop.permute.xlu0 %799 }
 0x1ea   : > { %v821_v5 = vpack.i.b16 %v800_v58, %v795_v42  ;;  %v824_v6 = vshrl.u32 %v800_v58, 16  ;;  %v832_v13 = vshrl.u32 %v804_v57, 16 }
 0x1ec   : > { %v825_v22 = vpack.i.b16 %v824_v6, %v823_v9 }
 0x1ed   : > { %v807_v62 = vpop.permute.xlu1 %806  ;;  %v802_v63 = vpop.permute.xlu0 %801 }
 0x1ee   : > { %v837_v2 = vpack.i.b16 %v807_v62, %v796_v45  ;;  %v840_v3 = vshrl.u32 %v807_v62, 16  ;;  %v831_v10 = vshrl.u32 %v802_v63, 16  ;;  %v829_v17 = vpack.i.b16 %v804_v57, %v802_v63 }
 0x1f0   : > { %v841_v14 = vpack.i.b16 %v840_v3, %v839_v7  ;;  %v873_v15 = vcombine.low %v821_v5, %v837_v2  ;;  %v874_v16 = vcombine.high %v821_v5, %v837_v2  ;;  %v833_v23 = vpack.i.b16 %v832_v13, %v831_v10 }
 0x1f1   : > { %v811_v11 = vpop.permute.xlu1 %810  ;;  %v809_v12 = vpop.permute.xlu0 %808 }
 0x1f2   : > { %v848_v18 = vshrl.u32 %v811_v11, 16  ;;  %v845_v19 = vpack.i.b16 %v811_v11, %v809_v12  ;;  %v847_v20 = vshrl.u32 %v809_v12, 16  ;;  %v881_v27 = vrot.slane %v873_v15, %v4400_v8 }
 0x1f3   : > { %v888_v28 = vrot.slane %v874_v16, %v4400_v8  ;;  %v1007_v32 = vcombine.low %v825_v22, %v841_v14  ;;  %v1008_v33 = vcombine.high %v825_v22, %v841_v14 }
 0x1f4   : > { %v849_v24 = vpack.i.b16 %v848_v18, %v847_v20  ;;  %v889_v25 = vcombine.low %v829_v17, %v845_v19  ;;  %v890_v26 = vcombine.high %v829_v17, %v845_v19 }
 0x1f5   : > { %v1015_v43 = vrot.slane %v1007_v32, %v4400_v8  ;;  %v1022_v44 = vrot.slane %v1008_v33, %v4400_v8 }
 0x1f6   : > { %v897_v34 = vrot.slane %v889_v25, %v4400_v8  ;;  %v904_v36 = vrot.slane %v890_v26, %v4400_v8  ;;  %v1023_v37 = vcombine.low %v833_v23, %v849_v24  ;;  %v1024_v38 = vcombine.high %v833_v23, %v849_v24 }
 0x1f8   : > { %v935_v39 = vcombine.low %v881_v27, %v897_v34  ;;  %v936_v40 = vcombine.high %v881_v27, %v897_v34  ;;  %v951_v41 = vcombine.low %v888_v28, %v904_v36  ;;  %v952_v42 = vcombine.high %v888_v28, %v904_v36 }
 0x1f9   : > { %v1031_v45 = vrot.slane %v1023_v37, %v4400_v8  ;;  %v1038_v47 = vrot.slane %v1024_v38, %v4400_v8 }
 0x1fa   : > { %v943_v48 = vrot.slane %v935_v39, %v4403_v21  ;;  %v950_v49 = vrot.slane %v936_v40, %v4403_v21  ;;  %v959_v50 = vrot.slane %v951_v41, %v4403_v21  ;;  %v966_v51 = vrot.slane %v952_v42, %v4403_v21 }
 0x1fb   : > { %v1069_v52 = vcombine.low %v1015_v43, %v1031_v45  ;;  %v1070_v53 = vcombine.high %v1015_v43, %v1031_v45  ;;  %v1085_v55 = vcombine.low %v1022_v44, %v1038_v47  ;;  %v1086_v56 = vcombine.high %v1022_v44, %v1038_v47 }
 0x1fc   : > { %v3263_v57 = vcombine.low %v943_v48, %v950_v49  ;;  %v3265_v58 = vcombine.high %v943_v48, %v950_v49  ;;  %v3267_v59 = vcombine.low %v959_v50, %v966_v51  ;;  %v3269_v60 = vcombine.high %v959_v50, %v966_v51 }
 0x1fd   : > { %v1077_v61 = vrot.slane %v1069_v52, %v4403_v21  ;;  %v1084_v62 = vrot.slane %v1070_v53, %v4403_v21  ;;  %v1093_v63 = vrot.slane %v1085_v55, %v4403_v21  ;;  %v1100_v2 = vrot.slane %v1086_v56, %v4403_v21 }
 0x1fe   : > { %v1149_v3 = vrot.slane %v3263_v57, %v4400_v8  ;;  %v1165_v4 = vrot.slane %v3265_v58, %v4400_v8  ;;  %v1181_v5 = vrot.slane %v3267_v59, %v4400_v8  ;;  %v1197_v6 = vrot.slane %v3269_v60, %v4400_v8 }
 0x1ff   : > { %v3271_v7 = vcombine.low %v1077_v61, %v1084_v62  ;;  %v3273_v9 = vcombine.high %v1077_v61, %v1084_v62  ;;  %v3275_v10 = vcombine.low %v1093_v63, %v1100_v2  ;;  %v3277_v11 = vcombine.high %v1093_v63, %v1100_v2 }
 0x200   : > { %v1206_v12 = vcombine.high %v1149_v3, %v1165_v4  ;;  %v1230_v13 = vcombine.high %v1181_v5, %v1197_v6  ;;  %v1205_v27 = vcombine.low %v1149_v3, %v1165_v4  ;;  %v1229_v28 = vcombine.low %v1181_v5, %v1197_v6 }
 0x201   : > { %v1267_v14 = vrot.slane %v3271_v7, %v4400_v8  ;;  %v1283_v15 = vrot.slane %v3273_v9, %v4400_v8  ;;  %v1299_v16 = vrot.slane %v3275_v10, %v4400_v8  ;;  %v1315_v17 = vrot.slane %v3277_v11, %v4400_v8  ;;  %v814_v7 = vpop.permute.xlu1 %813  ;;  %v816_v9 = vpop.permute.xlu0 %815 }
 0x202   : > { %v1220_v18 = vrot.slane %v1206_v12, %v4403_v21  ;;  %v1244_v19 = vrot.slane %v1230_v13, %v4403_v21  ;;  %v1213_v39 = vrot.slane %v1205_v27, %v4403_v21  ;;  %v1237_v40 = vrot.slane %v1229_v28, %v4403_v21 }
 0x203   : > { %v1324_v20 = vcombine.high %v1267_v14, %v1283_v15  ;;  %v1348_v22 = vcombine.high %v1299_v16, %v1315_v17  ;;  %v1323_v23 = vcombine.low %v1267_v14, %v1283_v15  ;;  %v1347_v25 = vcombine.low %v1299_v16, %v1315_v17 }
 0x204   : > { %v1255_v32 = vcombine.low %v1220_v18, %v1244_v19  ;;  %v1253_v44 = vcombine.low %v1213_v39, %v1237_v40  ;;  %v1256_v51 = vcombine.high %v1220_v18, %v1244_v19  ;;  %v1254_v60 = vcombine.high %v1213_v39, %v1237_v40 }
 0x205   : > { %v1338_v24 = vrot.slane %v1324_v20, %v4403_v21  ;;  %v1362_v26 = vrot.slane %v1348_v22, %v4403_v21  ;;  %v1331_v36 = vrot.slane %v1323_v23, %v4403_v21  ;;  %v1355_v37 = vrot.slane %v1347_v25, %v4403_v21  ;;  %v818_v15 = vpop.permute.xlu1 %817 }
 0x206   : > { %v1392_v43 = vshrl.u32 %v1255_v32, 16  ;;  %v1380_v52 = vshrl.u32 %v1253_v44, 16  ;;  %v1398_v59 = vshrl.u32 %v1256_v51, 16  ;;  %v1386_v3 = vshrl.u32 %v1254_v60, 16 }
 0x207   : > { %v1373_v33 = vcombine.low %v1338_v24, %v1362_v26  ;;  %v1371_v42 = vcombine.low %v1331_v36, %v1355_v37  ;;  %v1374_v49 = vcombine.high %v1338_v24, %v1362_v26  ;;  %v1372_v58 = vcombine.high %v1331_v36, %v1355_v37 }
 0x208   : > { %v855_v5 = vshrl.u32 %v4391_v54, 16  ;;  %v4460_v6 = vpack.i.b16 %v4085_v0, %v4085_v0  ;;  %v853_v10 = vpack.i.b16 %v814_v7, %v4391_v54  ;;  %v856_v11 = vshrl.u32 %v814_v7, 16 }
 0x209   : > { %v1391_v34 = vpack.i.b16 %v1373_v33, %v1255_v32  ;;  %v1393_v41 = vshrl.u32 %v1373_v33, 16  ;;  %v1379_v47 = vpack.i.b16 %v1371_v42, %v1253_v44  ;;  %v1381_v50 = vshrl.u32 %v1371_v42, 16 }
 0x20a   : > { %v1397_v53 = vpack.i.b16 %v1374_v49, %v1256_v51  ;;  %v1399_v57 = vshrl.u32 %v1374_v49, 16  ;;  %v1385_v62 = vpack.i.b16 %v1372_v58, %v1254_v60  ;;  %v1387_v2 = vshrl.u32 %v1372_v58, 16 }
 0x20b   : > { %v1431_v38 = vsel %vm1426_vm1, %v1391_v34, 0  ;;  %v1394_v45 = vpack.i.b16 %v1393_v41, %v1392_v43  ;;  %v1382_v55 = vpack.i.b16 %v1381_v50, %v1380_v52  ;;  %v857_v12 = vpack.i.b16 %v856_v11, %v855_v5 }
 0x20c   : > { %3475 = vmatpush3.bf16.xpose.msra.mxu1 %v1431_v38  ;;  %v1525_v56 = vsel %vm1426_vm1, %v1397_v53, 0  ;;  %v1400_v61 = vpack.i.b16 %v1399_v57, %v1398_v59  ;;  %v1388_v4 = vpack.i.b16 %v1387_v2, %v1386_v3  ;;  %v863_v13 = vshrl.u32 %v816_v9, 16 }
 0x20d   : > { %3480 = vmatprep.subr.bf16.mxu1 %v4086_v1  ;;  %v1478_v48 = vsel %vm1426_vm1, %v1394_v45, 0  ;;  %v905_v14 = vcombine.high %v853_v10, %v4460_v6  ;;  %v1039_v16 = vcombine.high %v857_v12, %v4460_v6  ;;  %v864_v17 = vshrl.u32 %v818_v15, 16 }
 0x20e   : > { %v1572_v63 = vsel %vm1426_vm1, %v1400_v61, 0  ;;  %v912_v18 = vrot.slane %v853_v10, %v4400_v8  ;;  %v861_v19 = vpack.i.b16 %v818_v15, %v816_v9  ;;  %v1046_v20 = vrot.slane %v857_v12, %v4400_v8 }
 0x20f   : > { %v865_v22 = vpack.i.b16 %v864_v17, %v863_v13  ;;  %v919_v23 = vrot.slane %v905_v14, %v4400_v8  ;;  %v1053_v25 = vrot.slane %v1039_v16, %v4400_v8 }
 0x210   : > { %v920_v24 = vcombine.high %v861_v19, %v4460_v6  ;;  %v927_v54 = vrot.slane %v861_v19, %v4400_v8 }
 0x211   : > { %v1054_v26 = vcombine.high %v865_v22, %v4460_v6  ;;  %v1061_v27 = vrot.slane %v865_v22, %v4400_v8 }
 0x212   : > { %v934_v28 = vrot.slane %v920_v24, %v4400_v8  ;;  %v967_v32 = vcombine.low %v912_v18, %v927_v54  ;;  %v968_v33 = vcombine.high %v912_v18, %v927_v54 }
 0x213   : > { %3477 = vmatmul.mubr.msk.bf16.vlgmr.msra.gmra.mxu1 %vm1426_vm1, %v1379_v47  ;;  %v1068_v34 = vrot.slane %v1054_v26, %v4400_v8  ;;  %v1101_v36 = vcombine.low %v1046_v20, %v1061_v27  ;;  %v1102_v37 = vcombine.high %v1046_v20, %v1061_v27 }
 0x214   : > { %3481 = vmatpush3.bf16.xpose.msra.mxu1 %v1478_v48  ;;  %3482 = vmatprep.mubr.msk.bf16.mxu1 %vm4087_vm0, %v4086_v1  ;;  %v975_v38 = vrot.slane %v967_v32, %v4403_v21  ;;  %v982_v39 = vrot.slane %v968_v33, %v4403_v21  ;;  %v983_v40 = vcombine.low %v919_v23, %v934_v28  ;;  %v1419_v32 = vadd.s32 8, %v4371_v30 }
 0x215   : > { %3486 = vmatprep.subr.bf16.mxu1 %v4086_v1  ;;  %v984_v41 = vcombine.high %v919_v23, %v934_v28  ;;  %v1109_v42 = vrot.slane %v1101_v36, %v4403_v21  ;;  %v1116_v43 = vrot.slane %v1102_v37, %v4403_v21  ;;  %v1117_v44 = vcombine.low %v1053_v25, %v1068_v34 }
 0x216   : > { %v1118_v45 = vcombine.high %v1053_v25, %v1068_v34  ;;  %v991_v47 = vrot.slane %v983_v40, %v4403_v21  ;;  %v3264_v51 = vcombine.low %v975_v38, %v982_v39  ;;  %v3266_v52 = vcombine.high %v975_v38, %v982_v39 }
 0x217   : > { %v998_v48 = vrot.slane %v984_v41, %v4403_v21  ;;  %v1125_v49 = vrot.slane %v1117_v44, %v4403_v21  ;;  %v3274_v57 = vcombine.high %v1109_v42, %v1116_v43  ;;  %v1421_v28 = vand.u32 127, %v568_v29 }
 0x218   : > { %v1132_v50 = vrot.slane %v1118_v45, %v4403_v21  ;;  %v1156_v60 = vrot.slane %v3264_v51, %v4400_v8  ;;  %v1172_v61 = vrot.slane %v3266_v52, %v4400_v8 }
 0x219   : > { %v3268_v53 = vcombine.low %v991_v47, %v998_v48  ;;  %v1290_v3 = vrot.slane %v3274_v57, %v4400_v8  ;;  %vm1422_vm2 = vcmp.gt.s32.totalorder %v1421_v28, %v4371_v30  ;;  %vm1423_vm3 = vcmp.gt.s32.totalorder %v1421_v28, %v1419_v32 }
 0x21a   : > { %v3276_v58 = vcombine.low %v1125_v49, %v1132_v50  ;;  %v3278_v59 = vcombine.high %v1125_v49, %v1132_v50  ;;  %v1221_v7 = vcombine.low %v1156_v60, %v1172_v61  ;;  %v1424_v33 = vsel %vm1422_vm2, -1e+30, %v4086_v1 }
 0x21b   : > { %3483 = vmatmul.mubr.msk.bf16.vlgmr.msra.gmra.mxu1 %vm1426_vm1, %v1382_v55  ;;  %v3270_v55 = vcombine.high %v991_v47, %v998_v48  ;;  %v1425_v38 = vsel %vm1423_vm3, -1e+30, %v4086_v1 }
 0x21c   : > { %3487 = vmatpush3.bf16.xpose.msra.mxu1 %v1525_v56  ;;  %3488 = vmatprep.mubr.msk.bf16.mxu1 %vm4087_vm0, %v4086_v1  ;;  %v3272_v56 = vcombine.low %v1109_v42, %v1116_v43  ;;  %v1322_v5 = vrot.slane %v3278_v59, %v4400_v8  ;;  %v1228_v12 = vrot.slane %v1221_v7, %v4403_v21 }
 0x21d   : > { %3492 = vmatprep.subr.bf16.mxu1 %v4086_v1 }
 0x21e   : > { %v1274_v2 = vrot.slane %v3272_v56, %v4400_v8 }
 0x220   : > { %v1339_v10 = vcombine.low %v1274_v2, %v1290_v3 }
 0x222   : > { %v1346_v14 = vrot.slane %v1339_v10, %v4403_v21 }
 0x223   : > { %3489 = vmatmul.mubr.msk.bf16.vlgmr.msra.gmra.mxu1 %vm1426_vm1, %v1385_v62  ;;  %v1188_v62 = vrot.slane %v3268_v53, %v4400_v8 }
 0x224   : > { %3493 = vmatpush3.bf16.xpose.msra.mxu1 %v1572_v63  ;;  %3494 = vmatprep.mubr.msk.bf16.mxu1 %vm4087_vm0, %v4086_v1  ;;  %v1204_v63 = vrot.slane %v3270_v55, %v4400_v8 }
 0x225   : > { %3504 = vmatprep.subr.bf16.mxu1 %v4086_v1 }
 0x226   : > { %v1245_v9 = vcombine.low %v1188_v62, %v1204_v63 }
 0x228   : > { %v1252_v13 = vrot.slane %v1245_v9, %v4403_v21 }
 0x22a   : > { %v1257_v16 = vcombine.low %v1228_v12, %v1252_v13  ;;  %v4495_v18 = vcombine.high %v1228_v12, %v1252_v13 }
 0x22b   : > { %3495 = vmatmul.mubr.msk.bf16.vlgmr.msra.gmra.mxu1 %vm1426_vm1, %v1388_v4  ;;  %v1306_v4 = vrot.slane %v3276_v58, %v4400_v8 }
 0x22c   : > { %3506 = vmatprep.mubr.msk.bf16.mxu1 %vm4087_vm0, %v4086_v1  ;;  %v1405_v22 = vshrl.u32 %v1257_v16, 16  ;;  %v1413_v54 = vshrl.u32 %v4495_v18, 16 }
 0x22d   : > { %v1363_v11 = vcombine.low %v1306_v4, %v1322_v5 }
 0x22f   : > { %v1370_v15 = vrot.slane %v1363_v11, %v4403_v21 }
 0x231   : > { %v1375_v17 = vcombine.low %v1346_v14, %v1370_v15  ;;  %v4497_v19 = vcombine.high %v1346_v14, %v1370_v15 }
 0x233   : > { %v1403_v20 = vpack.i.b16 %v1375_v17, %v1257_v16  ;;  %v1406_v23 = vshrl.u32 %v1375_v17, 16  ;;  %v1411_v24 = vpack.i.b16 %v4497_v19, %v4495_v18  ;;  %v1414_v25 = vshrl.u32 %v4497_v19, 16 }
 0x235   : > { %3499 = vmatpush3.bf16.msra.mxu0 %v1403_v20  ;;  %v1407_v26 = vpack.i.b16 %v1406_v23, %v1405_v22  ;;  %v4504_v27 = vpack.i.b16 %v1414_v25, %v1413_v54 }
 0x236   : > { %3510 = vmatprep.subr.bf16.mxu0 %v4086_v1 }
 0x237   : > { %3505 = vmatpush3.bf16.msra.mxu1 %v1407_v26 }
 0x238   : > { %3516 = vmatprep.subr.bf16.mxu1 %v4086_v1 }
 0x2d3   : > { %v1467_v34 = vpop.f32.mrf.mxu1 }
 0x2d4   : > { %v1468_v36 = vadd.f32 %v1467_v34, %v1424_v33 }
 0x2d5   : > { %v3478_v37 = vpop.f32.mrf.mxu1 }
 0x2d6   : > { %v1616_v39 = vsel %vm1615_vm4, %v1468_v36, -inf }
 0x2d7   : > { %1617 = vmax.xlane.f32.xlu0 %v1616_v39  ;;  %v1470_v40 = vpop.f32.mrf.mxu1 }
 0x2d8   : > { %v1471_v41 = vadd.f32 %v1470_v40, %v1425_v38 }
 0x2d9   : > { %v3479_v42 = vpop.f32.mrf.mxu1 }
 0x2da   : > { %v1619_v29 = vsel %vm1615_vm4, %v1471_v41, -inf }
 0x2db   : > { %1620 = vmax.xlane.f32.xlu1 %v1619_v29  ;;  %v1514_v43 = vpop.f32.mrf.mxu1 }
 0x2dc   : > { %v1515_v44 = vadd.f32 %v1514_v43, %v1424_v33 }
 0x2dd   : > { %v3484_v45 = vpop.f32.mrf.mxu1 }
 0x2de   : > { %v1622_v47 = vsel %vm1615_vm4, %v1515_v44, -inf }
 0x2df   : > { %1623 = vmax.xlane.f32.xlu0 %v1622_v47  ;;  %v1517_v48 = vpop.f32.mrf.mxu1 }
 0x2e0   : > { %v1518_v49 = vadd.f32 %v1517_v48, %v1425_v38 }
 0x2e1   : > { %v3485_v50 = vpop.f32.mrf.mxu1 }
 0x2e2   : > { %v1625_v51 = vsel %vm1615_vm4, %v1518_v49, -inf }
 0x2e3   : > { %1626 = vmax.xlane.f32.xlu0 %v1625_v51  ;;  %v1561_v52 = vpop.f32.mrf.mxu1 }
 0x2e4   : > { %v1562_v53 = vadd.f32 %v1561_v52, %v1424_v33 }
 0x2e5   : > { %v3490_v55 = vpop.f32.mrf.mxu1 }
 0x2e6   : > { %v1628_v56 = vsel %vm1615_vm4, %v1562_v53, -inf }
 0x2e7   : > { %1629 = vmax.xlane.f32.xlu1 %v1628_v56  ;;  %v1564_v57 = vpop.f32.mrf.mxu1 }
 0x2e8   : > { %v1565_v58 = vadd.f32 %v1564_v57, %v1425_v38 }
 0x2e9   : > { %v3491_v59 = vpop.f32.mrf.mxu1 }
 0x2ea   : > { %v1631_v60 = vsel %vm1615_vm4, %v1565_v58, -inf  ;;  %v3690_v59 = vld [vmem:[#allocation7 + $0x30] sm:$0xff]  }
 0x2eb   : > { %1632 = vmax.xlane.f32.xlu0 %v1631_v60  ;;  %v1608_v61 = vpop.f32.mrf.mxu1  ;;  %v3691_v60 = vld [vmem:[#allocation7 + $0x28] sm:$0xff]  }
 0x2ec   : > { %v1609_v62 = vadd.f32 %v1608_v61, %v1424_v33  ;;  %v3692_v61 = vld [vmem:[#allocation7 + $0x20] sm:$0xff]  }
 0x2ed   : > { %v3496_v63 = vpop.f32.mrf.mxu1 }
 0x2ee   : > { %v1634_v2 = vsel %vm1615_vm4, %v1609_v62, -inf  ;;  %v3694_v63 = vld [vmem:[#allocation7 + $0x10] sm:$0xff]  }
 0x2ef   : > { %1635 = vmax.xlane.f32.xlu0 %v1634_v2  ;;  %v1611_v3 = vpop.f32.mrf.mxu1  ;;  %v3695_v2 = vld [vmem:[#allocation7 + $0x8] sm:$0xff]  }
 0x2f0   : > { %v1612_v4 = vadd.f32 %v1611_v3, %v1425_v38 }
 0x2f1   : > { %v3497_v5 = vpop.f32.mrf.mxu1 }
 0x2f2   : > { %v1637_v7 = vsel %vm1615_vm4, %v1612_v4, -inf }
 0x2f3   : > { %1638 = vmax.xlane.f32.xlu1 %v1637_v7 }
 0x360   : > { %v1618_v9 = vpop.xlane.xlu0 %1617 }
 0x361   : > { %v1640_v10 = vsub.f32 %v1468_v36, %v1618_v9 }
 0x363   : > { %v1648_v11 = vmul.f32 1.442695, %v1640_v10 }
 0x364   : > { %v1621_v12 = vpop.xlane.xlu1 %1620 }
 0x365   : > { %3777 = vpow2.f32 %v1648_v11  ;;  %v1641_v13 = vsub.f32 %v1471_v41, %v1621_v12 }
 0x367   : > { %v1650_v14 = vmul.f32 1.442695, %v1641_v13 }
 0x368   : > { %v1624_v15 = vpop.xlane.xlu0 %1623 }
 0x369   : > { %3779 = vpow2.f32 %v1650_v14  ;;  %v1642_v16 = vsub.f32 %v1515_v44, %v1624_v15 }
 0x36b   : > { %v1652_v17 = vmul.f32 1.442695, %v1642_v16 }
 0x36c   : > { %v1627_v20 = vpop.xlane.xlu0 %1626 }
 0x36d   : > { %3781 = vpow2.f32 %v1652_v17  ;;  %v1643_v22 = vsub.f32 %v1518_v49, %v1627_v20 }
 0x36f   : > { %v1654_v23 = vmul.f32 1.442695, %v1643_v22 }
 0x370   : > { %v1630_v54 = vpop.xlane.xlu1 %1629 }
 0x371   : > { %3783 = vpow2.f32 %v1654_v23  ;;  %v1644_v25 = vsub.f32 %v1562_v53, %v1630_v54 }
 0x372   : > { %v3778_v26 = vpop.eup %3777 }
 0x373   : > { %v1656_v28 = vmul.f32 1.442695, %v1644_v25  ;;  %v1664_v32 = vsel %vm1615_vm4, %v3778_v26, 0.0 }
 0x374   : > { %v1633_v33 = vpop.xlane.xlu0 %1632  ;;  %1665 = vadd.xlane.f32.xlu0 %v1664_v32 }
 0x375   : > { %3785 = vpow2.f32 %v1656_v28  ;;  %v1645_v34 = vsub.f32 %v1565_v58, %v1633_v33  ;;  %v3689_v58 = vld [vmem:[#allocation7 + $0x38] sm:$0xff]  }
 0x376   : > { %v3780_v36 = vpop.eup %3779 }
 0x377   : > { %v1658_v37 = vmul.f32 1.442695, %v1645_v34  ;;  %v1667_v38 = vsel %vm1615_vm4, %v3780_v36, 0.0  ;;  %v1688_v39 = vpack.c.bf16 %v3780_v36, %v3778_v26 }
 0x378   : > { %v1636_v40 = vpop.xlane.xlu0 %1635  ;;  %1668 = vadd.xlane.f32.xlu1 %v1667_v38 }
 0x379   : > { %3787 = vpow2.f32 %v1658_v37  ;;  %v1646_v41 = vsub.f32 %v1609_v62, %v1636_v40  ;;  %3501 = vmatmul.mubr.msk.bf16.vlgmr.msra.gmra.mxu0 %vm1615_vm4, %v1688_v39  ;;  %v3693_v62 = vld [vmem:[#allocation7 + $0x18] sm:$0xff]  }
 0x37a   : > { %v3782_v42 = vpop.eup %3781  ;;  %3511 = vmatpush3.bf16.msra.mxu0 %v1411_v24  ;;  %3512 = vmatprep.mubr.msk.bf16.mxu0 %vm4087_vm0, %v4086_v1 }
 0x37b   : > { %v1660_v29 = vmul.f32 1.442695, %v1646_v41  ;;  %v1670_v43 = vsel %vm1615_vm4, %v3782_v42, 0.0  ;;  %3522 = vmatprep.subr.bf16.mxu0 %v4086_v1 }
 0x37c   : > { %1671 = vadd.xlane.f32.xlu0 %v1670_v43  ;;  %v1639_v44 = vpop.xlane.xlu1 %1638 }
 0x37d   : > { %3789 = vpow2.f32 %v1660_v29  ;;  %v1647_v45 = vsub.f32 %v1612_v4, %v1639_v44 }
 0x37e   : > { %v3784_v47 = vpop.eup %3783 }
 0x37f   : > { %v1662_v48 = vmul.f32 1.442695, %v1647_v45  ;;  %v1673_v49 = vsel %vm1615_vm4, %v3784_v47, 0.0  ;;  %v1689_v50 = vpack.c.bf16 %v3784_v47, %v3782_v42 }
 0x380   : > { %1674 = vadd.xlane.f32.xlu1 %v1673_v49 }
 0x381   : > { %3791 = vpow2.f32 %v1662_v48  ;;  %3507 = vmatmul.mubr.msk.bf16.vlgmr.msra.gmra.mxu1 %vm1615_vm4, %v1689_v50 }
 0x382   : > { %v3786_v18 = vpop.eup %3785  ;;  %3517 = vmatpush3.bf16.msra.mxu1 %v4504_v27  ;;  %3518 = vmatprep.mubr.msk.bf16.mxu1 %vm4087_vm0, %v4086_v1 }
 0x383   : > { %v1676_v19 = vsel %vm1615_vm4, %v3786_v18, 0.0 }
 0x384   : > { %1677 = vadd.xlane.f32.xlu0 %v1676_v19 }
 0x386   : > { %v3788_v24 = vpop.eup %3787 }
 0x387   : > { %v1679_v51 = vsel %vm1615_vm4, %v3788_v24, 0.0  ;;  %v1690_v52 = vpack.c.bf16 %v3788_v24, %v3786_v18 }
 0x388   : > { %1680 = vadd.xlane.f32.xlu1 %v1679_v51 }
 0x389   : > { %3513 = vmatmul.mubr.msk.bf16.vlgmr.msra.gmra.mxu0 %vm1615_vm4, %v1690_v52 }
 0x38a   : > { %v3790_v53 = vpop.eup %3789  ;;  %3538 = vmatprep.mubr.msk.bf16.mxu0 %vm4087_vm0, %v4086_v1  ;;  %3523 = vmatpush3.bf16.msra.mxu0 %v3689_v58 }
 0x38b   : > { %v1682_v55 = vsel %vm1615_vm4, %v3790_v53, 0.0  ;;  %3524 = vmatprep.subr.bf16.mxu0 %v4086_v1 }
 0x38c   : > { %1683 = vadd.xlane.f32.xlu0 %v1682_v55 }
 0x38e   : > { %v3792_v27 = vpop.eup %3791  ;;  %3525 = vmatpush3.bf16.msra.mxu0 %v3690_v59 }
 0x38f   : > { %v1685_v56 = vsel %vm1615_vm4, %v3792_v27, 0.0  ;;  %v1691_v57 = vpack.c.bf16 %v3792_v27, %v3790_v53  ;;  %3526 = vmatprep.subr.bf16.mxu0 %v4086_v1 }
 0x390   : > { %1686 = vadd.xlane.f32.xlu1 %v1685_v56 }
 0x391   : > { %3519 = vmatmul.mubr.msk.bf16.vlgmr.msra.gmra.mxu1 %vm1615_vm4, %v1691_v57 }
 0x392   : > { %2566 = vmatprep.mubr.bf16.mxu1 %v4085_v0  ;;  %3527 = vmatpush3.bf16.msra.mxu0 %v3691_v60 }
 0x393   : > { %3528 = vmatprep.subr.bf16.mxu0 %v4086_v1 }
 0x396   : > { %3529 = vmatpush3.bf16.msra.mxu0 %v3692_v61 }
 0x397   : > { %3530 = vmatprep.subr.bf16.mxu0 %v4086_v1 }
 0x39a   : > { %3531 = vmatpush3.bf16.msra.mxu0 %v3693_v62 }
 0x39b   : > { %3532 = vmatprep.subr.bf16.mxu0 %v4086_v1 }
 0x39e   : > { %3533 = vmatpush3.bf16.msra.mxu0 %v3694_v63 }
 0x39f   : > { %3534 = vmatprep.subr.bf16.mxu0 %v4086_v1 }
 0x3a2   : > { %3535 = vmatpush3.bf16.msra.mxu0 %v3695_v2 }
 0x3a3   : > { %3536 = vmatprep.subr.bf16.mxu0 %v4086_v1 }
 0x3fd   : > { %v1666_v3 = vpop.xlane.xlu0 %1665 }
 0x401   : > { %v1669_v4 = vpop.xlane.xlu1 %1668 }
 0x405   : > { %v1672_v9 = vpop.xlane.xlu0 %1671 }
 0x409   : > { %v1675_v10 = vpop.xlane.xlu1 %1674 }
 0x40a   : > { %3793 = vrcp.f32 %v1675_v10 }
 0x40b   : > { %3795 = vrcp.f32 %v1669_v4 }
 0x40c   : > { %3797 = vrcp.f32 %v1672_v9 }
 0x40d   : > { %v1678_v13 = vpop.xlane.xlu0 %1677  ;;  %3799 = vrcp.f32 %v1666_v3 }
 0x411   : > { %v1681_v14 = vpop.xlane.xlu1 %1680 }
 0x412   : > { %3801 = vrcp.f32 %v1681_v14 }
 0x413   : > { %3803 = vrcp.f32 %v1678_v13 }
 0x415   : > { %v1684_v17 = vpop.xlane.xlu0 %1683 }
 0x416   : > { %3805 = vrcp.f32 %v1684_v17 }
 0x417   : > { %v3794_v25 = vpop.eup %3793 }
 0x418   : > { %v3796_v26 = vpop.eup %3795 }
 0x419   : > { %v1687_v20 = vpop.xlane.xlu1 %1686  ;;  %v3798_v33 = vpop.eup %3797 }
 0x41a   : > { %3807 = vrcp.f32 %v1687_v20  ;;  %v3800_v38 = vpop.eup %3799 }
 0x41f   : > { %v3802_v39 = vpop.eup %3801 }
 0x420   : > { %v3804_v43 = vpop.eup %3803 }
 0x423   : > { %v3806_v47 = vpop.eup %3805 }
 0x427   : > { %v3808_v49 = vpop.eup %3807 }
 0x439   : > { %v1729_v5 = vpop.f32.mrf.mxu0 }
 0x43a   : > { %v1876_v40 = vmul.f32 %v3800_v38, %v1729_v5 }
 0x43b   : > { %v3502_v7 = vpop.f32.mrf.mxu0 }
 0x43d   : > { %v1732_v11 = vpop.f32.mrf.mxu0 }
 0x43e   : > { %v1877_v34 = vmul.f32 %v3796_v26, %v1732_v11 }
 0x43f   : > { %v3503_v12 = vpop.f32.mrf.mxu0 }
 0x440   : > { %v1884_v44 = vpack.c.bf16 %v1877_v34, %v1876_v40 }
 0x441   : > { %v1773_v15 = vpop.f32.mrf.mxu1 }
 0x442   : > { %v1878_v36 = vmul.f32 %v3798_v33, %v1773_v15  ;;  %v1892_v53 = vshrl.u32 %v1884_v44, 16 }
 0x443   : > { %v3508_v16 = vpop.f32.mrf.mxu1 }
 0x445   : > { %v1776_v1 = vpop.f32.mrf.mxu1 }
 0x446   : > { %v1879_v28 = vmul.f32 %v3794_v25, %v1776_v1 }
 0x447   : > { %v3509_v22 = vpop.f32.mrf.mxu1 }
 0x448   : > { %v1885_v41 = vpack.c.bf16 %v1879_v28, %v1878_v36 }
 0x449   : > { %v1817_v23 = vpop.f32.mrf.mxu0 }
 0x44a   : > { %v1880_v48 = vmul.f32 %v3804_v43, %v1817_v23  ;;  %v1890_v50 = vpack.i.b16 %v1885_v41, %v1884_v44  ;;  %v1893_v18 = vshrl.u32 %v1885_v41, 16 }
 0x44b   : > { %v3514_v54 = vpop.f32.mrf.mxu0 }
 0x44c   : > { %v1894_v56 = vpack.i.b16 %v1893_v18, %v1892_v53  ;;  %v1904_v57 = vcombine.high %v1890_v50, %v4460_v6  ;;  %v1911_v61 = vrot.slane %v1890_v50, %v4400_v8 }
 0x44d   : > { %v1820_v32 = vpop.f32.mrf.mxu0 }
 0x44e   : > { %v1881_v29 = vmul.f32 %v3802_v39, %v1820_v32  ;;  %v1918_v3 = vrot.slane %v1904_v57, %v4400_v8  ;;  %v1970_v4 = vcombine.high %v1894_v56, %v4460_v6  ;;  %v1977_v11 = vrot.slane %v1894_v56, %v4400_v8 }
 0x44f   : > { %v3515_v37 = vpop.f32.mrf.mxu0 }
 0x450   : > { %v1886_v24 = vpack.c.bf16 %v1881_v29, %v1880_v48  ;;  %v1984_v17 = vrot.slane %v1970_v4, %v4400_v8 }
 0x451   : > { %v1861_v42 = vpop.f32.mrf.mxu1 }
 0x452   : > { %v1882_v51 = vmul.f32 %v3806_v47, %v1861_v42  ;;  %v1900_v58 = vshrl.u32 %v1886_v24, 16 }
 0x453   : > { %v3520_v45 = vpop.f32.mrf.mxu1 }
 0x454   : > { %v3696_v45 = vld [vmem:[#allocation7] sm:$0xff]  }
 0x455   : > { %v1864_v19 = vpop.f32.mrf.mxu1  ;;  %3537 = vmatpush3.bf16.msra.mxu0 %v3696_v45  ;;  %v3714_v45 = vld [vmem:[#allocation10 + $0xac] ss:$16 sps:$4 sm:$0xff]  }
 0x456   : > { %v1883_v52 = vmul.f32 %v3808_v49, %v1864_v19 }
 0x457   : > { %v3521_v55 = vpop.f32.mrf.mxu1 }
 0x458   : > { %v1887_v27 = vpack.c.bf16 %v1883_v52, %v1882_v51 }
 0x45a   : > { %v1898_v59 = vpack.i.b16 %v1887_v27, %v1886_v24  ;;  %v1901_v60 = vshrl.u32 %v1887_v27, 16 }
 0x45c   : > { %v1902_v62 = vpack.i.b16 %v1901_v60, %v1900_v58  ;;  %v1919_v63 = vcombine.high %v1898_v59, %v4460_v6  ;;  %v1926_v2 = vrot.slane %v1898_v59, %v4400_v8 }
 0x45e   : > { %v1933_v5 = vrot.slane %v1919_v63, %v4400_v8  ;;  %v1934_v7 = vcombine.low %v1911_v61, %v1926_v2  ;;  %v1935_v9 = vcombine.high %v1911_v61, %v1926_v2  ;;  %v1985_v10 = vcombine.high %v1902_v62, %v4460_v6 }
 0x45f   : > { %v1992_v12 = vrot.slane %v1902_v62, %v4400_v8 }
 0x460   : > { %v1942_v13 = vrot.slane %v1934_v7, %v4403_v21  ;;  %v1949_v14 = vrot.slane %v1935_v9, %v4403_v21  ;;  %v1950_v15 = vcombine.low %v1918_v3, %v1933_v5  ;;  %v1951_v16 = vcombine.high %v1918_v3, %v1933_v5 }
 0x461   : > { %v1999_v20 = vrot.slane %v1985_v10, %v4400_v8  ;;  %v2000_v1 = vcombine.low %v1977_v11, %v1992_v12  ;;  %v2001_v22 = vcombine.high %v1977_v11, %v1992_v12 }
 0x462   : > { %v1958_v23 = vrot.slane %v1950_v15, %v4403_v21  ;;  %v1965_v6 = vrot.slane %v1951_v16, %v4403_v21  ;;  %v2036_v54 = vcombine.low %v1942_v13, %v1949_v14  ;;  %v3287_v25 = vcombine.high %v1942_v13, %v1949_v14  ;;  %v3291_v13 = vld [vmem:[#allocation8] ss:$0 sm:$0xff] }
 0x463   : > { %v2008_v26 = vrot.slane %v2000_v1, %v4403_v21  ;;  %v2015_v28 = vrot.slane %v2001_v22, %v4403_v21  ;;  %v2016_v32 = vcombine.low %v1984_v17, %v1999_v20  ;;  %v2017_v33 = vcombine.high %v1984_v17, %v1999_v20  ;;  %v3833_v17 = vld [vmem:[%s4333_s29] sm:$0xff] }
 0x464   : > { %v2043_v34 = vrot.slane %v2036_v54, %v4400_v8  ;;  %v2051_v36 = vrot.slane %v3287_v25, %v4400_v8  ;;  %v2052_v37 = vcombine.low %v1958_v23, %v1965_v6  ;;  %v3288_v38 = vcombine.high %v1958_v23, %v1965_v6  ;;  %v3834_v6 = vld [vmem:[%s4333_s29 + $0x8] sm:$0xff]  ;;  %v3697_v25 = vld [vmem:[#allocation10 + $0xe0] ss:$16 sps:$4 sm:$0xff]   ;;  %s3086_s29 = scalar_lea.sflag [#allocation4], %s4327_s7 }
 0x465   : > { %v2024_v39 = vrot.slane %v2016_v32, %v4403_v21  ;;  %v2031_v40 = vrot.slane %v2017_v33, %v4403_v21  ;;  %v2086_v41 = vcombine.low %v2008_v26, %v2015_v28  ;;  %v3289_v42 = vcombine.high %v2008_v26, %v2015_v28  ;;  %v3699_v26 = vld [vmem:[#allocation10 + $0xe4] ss:$16 sps:$4 sm:$0xff]   ;;  %v3700_v28 = vld [vmem:[#allocation10 + $0xe8] ss:$16 sps:$4 sm:$0xff]   ;;  %v3702_v32 = vld [vmem:[#allocation10 + $0xec] ss:$16 sps:$4 sm:$0xff]  }
 0x466   : > { %v2059_v29 = vrot.slane %v2052_v37, %v4400_v8  ;;  %v2067_v43 = vrot.slane %v3288_v38, %v4400_v8  ;;  %v2068_v44 = vcombine.low %v2043_v34, %v2051_v36  ;;  %2534 = vmatprep.subr.bf16.mxu1 %v3699_v26  ;;  %2577 = vmatprep.subr.bf16.mxu0 %v3702_v32  ;;  %v3749_v26 = vld [vmem:[#allocation11 + $0x70] sm:$0xff]  }
 0x467   : > { %v2093_v47 = vrot.slane %v2086_v41, %v4400_v8  ;;  %v2101_v48 = vrot.slane %v3289_v42, %v4400_v8  ;;  %v2102_v49 = vcombine.low %v2024_v39, %v2031_v40  ;;  %v3290_v50 = vcombine.high %v2024_v39, %v2031_v40  ;;  %2535 = vmatpush1.bf16.msra.mxu1 %v3697_v25  ;;  %v3705_v41 = vld [vmem:[#allocation10 + $0xc4] ss:$16 sps:$4 sm:$0xff]   ;;  %v3708_v42 = vld [vmem:[#allocation10 + $0xcc] ss:$16 sps:$4 sm:$0xff]  }
 0x468   : > { %v2076_v18 = vcombine.low %v2059_v29, %v2067_v43  ;;  %v2075_v52 = vrot.slane %v2068_v44, %v4403_v21  ;;  %v3703_v29 = vld [vmem:[#allocation10 + $0xc0] ss:$16 sps:$4 sm:$0xff]   ;;  %v3706_v43 = vld [vmem:[#allocation10 + $0xc8] ss:$16 sps:$4 sm:$0xff]   ;;  %2536 = vmatprep.subr.bf16.mxu1 %v3705_v41  ;;  %v3711_v44 = vld [vmem:[#allocation10 + $0xa4] ss:$16 sps:$4 sm:$0xff]  }
 0x469   : > { %v2109_v19 = vrot.slane %v2102_v49, %v4400_v8  ;;  %v2117_v24 = vrot.slane %v3290_v50, %v4400_v8  ;;  %v2118_v51 = vcombine.low %v2093_v47, %v2101_v48  ;;  %v3709_v47 = vld [vmem:[#allocation10 + $0xa0] ss:$16 sps:$4 sm:$0xff]   ;;  %v3712_v48 = vld [vmem:[#allocation10 + $0xa8] ss:$16 sps:$4 sm:$0xff]   ;;  %v3717_v50 = vld [vmem:[#allocation10 + $0x84] ss:$16 sps:$4 sm:$0xff]  }
 0x46a   : > { %v2083_v53 = vrot.slane %v2076_v18, %v4403_v21  ;;  %v3715_v49 = vld [vmem:[#allocation10 + $0x80] ss:$16 sps:$4 sm:$0xff]   ;;  %v3718_v18 = vld [vmem:[#allocation10 + $0x88] ss:$16 sps:$4 sm:$0xff]  }
 0x46b   : > { %v2126_v55 = vcombine.low %v2109_v19, %v2117_v24  ;;  %v2125_v56 = vrot.slane %v2118_v51, %v4403_v21  ;;  %2537 = vmatpush1.bf16.msra.mxu1 %v3703_v29  ;;  %v3720_v19 = vld [vmem:[#allocation10 + $0x8c] ss:$16 sps:$4 sm:$0xff]   ;;  %v3723_v24 = vld [vmem:[#allocation10 + $0x64] ss:$16 sps:$4 sm:$0xff]  }
 0x46c   : > { %v2084_v27 = vcombine.low %v2075_v52, %v2083_v53  ;;  %v2085_v58 = vcombine.high %v2075_v52, %v2083_v53  ;;  %2538 = vmatprep.subr.bf16.mxu1 %v3711_v44  ;;  %v3726_v51 = vld [vmem:[#allocation10 + $0x6c] ss:$16 sps:$4 sm:$0xff]   ;;  %v3721_v52 = vld [vmem:[#allocation10 + $0x60] ss:$16 sps:$4 sm:$0xff]   ;;  %v3724_v53 = vld [vmem:[#allocation10 + $0x68] ss:$16 sps:$4 sm:$0xff]  }
 0x46d   : > { %v2133_v57 = vrot.slane %v2126_v55, %v4403_v21  ;;  %v3729_v55 = vld [vmem:[#allocation10 + $0x44] ss:$16 sps:$4 sm:$0xff]   ;;  %v3748_v25 = vld [vmem:[#allocation11 + $0xb8] sm:$0xff]  }
 0x46e   : > { %v2139_v61 = vshrl.u32 %v2084_v27, 16  ;;  %v2145_v4 = vshrl.u32 %v2085_v58, 16  ;;  %v3751_v32 = vld [vmem:[#allocation11 + $0x30] sm:$0xff]   ;;  %v3760_v41 = vld [vmem:[#allocation11 + $0xa0] sm:$0xff]   ;;  %v3762_v29 = vld [vmem:[#allocation11 + $0xd8] sm:$0xff]  }
 0x46f   : > { %v2135_v59 = vcombine.high %v2125_v56, %v2133_v57  ;;  %v2134_v60 = vcombine.low %v2125_v56, %v2133_v57  ;;  %2539 = vmatpush1.bf16.msra.mxu1 %v3709_v47  ;;  %v3727_v56 = vld [vmem:[#allocation10 + $0x40] ss:$16 sps:$4 sm:$0xff]   ;;  %v3730_v57 = vld [vmem:[#allocation10 + $0x48] ss:$16 sps:$4 sm:$0xff]  }
 0x470   : > { %2540 = vmatprep.subr.bf16.mxu1 %v3717_v50  ;;  %v3764_v44 = vld [vmem:[#allocation11 + $0x98] sm:$0xff]   ;;  %v3766_v47 = vld [vmem:[#allocation11 + $0xd0] sm:$0xff]   ;;  %v3769_v50 = vld [vmem:[#allocation11 + $0x48] sm:$0xff]  }
 0x471   : > { %v2144_v62 = vpack.i.b16 %v2135_v59, %v2085_v58  ;;  %v2140_v63 = vshrl.u32 %v2134_v60, 16  ;;  %v2146_v2 = vshrl.u32 %v2135_v59, 16  ;;  %v2138_v3 = vpack.i.b16 %v2134_v60, %v2084_v27  ;;  %v3732_v27 = vld [vmem:[#allocation10 + $0x4c] ss:$16 sps:$4 sm:$0xff]   ;;  %v3735_v58 = vld [vmem:[#allocation10 + $0x24] ss:$16 sps:$4 sm:$0xff]  }
 0x472   : > { %v3738_v59 = vld [vmem:[#allocation10 + $0x2c] ss:$16 sps:$4 sm:$0xff]   ;;  %v3733_v60 = vld [vmem:[#allocation10 + $0x20] ss:$16 sps:$4 sm:$0xff]  }
 0x473   : > { %2150 = vrot.lane.b32.xlu1 %v2144_v62, %s4090_s19  ;;  %v2141_v8 = vpack.i.b16 %v2140_v63, %v2139_v61  ;;  %v2147_v5 = vpack.i.b16 %v2146_v2, %v2145_v4  ;;  %2541 = vmatpush1.bf16.msra.mxu1 %v3715_v49  ;;  %v3736_v61 = vld [vmem:[#allocation10 + $0x28] ss:$16 sps:$4 sm:$0xff]   ;;  %v3741_v62 = vld [vmem:[#allocation10 + $0x4] ss:$16 sps:$4 sm:$0xff]   ;;  %v3744_v63 = vld [vmem:[#allocation10 + $0xc] ss:$16 sps:$4 sm:$0xff]  }
 0x474   : > { %2542 = vmatprep.subr.bf16.mxu1 %v3723_v24  ;;  %v3739_v2 = vld [vmem:[#allocation10] ss:$16 sps:$4 sm:$0xff]   ;;  %v3772_v24 = vld [vmem:[#allocation11 + $0x88] sm:$0xff]   ;;  %s4786_s19 = sld [smem:[#allocation24_spill]] }
 0x475   : > { %2148 = vrot.lane.b32.xlu0 %v2141_v8, %s4088_s15  ;;  %v3768_v49 = vld [vmem:[#allocation11 + $0x90] sm:$0xff]  }
 0x477   : > { %2152 = vrot.lane.b32.xlu1 %v2147_v5, %s4089_s20  ;;  %2543 = vmatpush1.bf16.msra.mxu1 %v3721_v52  ;;  %v3774_v52 = vld [vmem:[#allocation11 + $0xc0] sm:$0xff]  }
 0x478   : > { %2544 = vmatprep.subr.bf16.mxu1 %v3729_v55  ;;  %v3776_v55 = vld [vmem:[#allocation11 + $0x80] sm:$0xff]  }
 0x47b   : > { %2545 = vmatpush1.bf16.msra.mxu1 %v3727_v56  ;;  %v2368_v56 = vsub.s32 3, %v4371_v30 }
 0x47c   : > { %2546 = vmatprep.subr.bf16.mxu1 %v3735_v58 }
 0x47f   : > { %2547 = vmatpush1.bf16.msra.mxu1 %v3733_v60 }
 0x480   : > { %2548 = vmatprep.subr.bf16.mxu1 %v3741_v62 }
 0x483   : > { %2549 = vmatpush1.bf16.msra.mxu1 %v3739_v2 }
 0x4e5   : > { %v2151_v7 = vpop.permute.xlu1 %2150 }
 0x4e7   : > { %v2149_v21 = vpop.permute.xlu0 %2148 }
 0x4e8   : > { %v2156_v9 = vsel %vm1426_vm1, %v2138_v3, %v2149_v21  ;;  %v3742_v3 = vld [vmem:[#allocation10 + $0x8] ss:$16 sps:$4 sm:$0xff]  }
 0x4e9   : > { %v2153_v10 = vpop.permute.xlu1 %2152  ;;  %v2159_v11 = vsel %vm2157_vm5, %v2156_v9, %v2151_v7 }
 0x4ea   : > { %v2162_v12 = vsel %vm2160_vm6, %v2159_v11, %v2153_v10 }
 0x4eb   : > { %3539 = vmatmul.mubr.bf16.vlgmr.msra.gmra.mxu0 %v2162_v12  ;;  %v3300_v12 = vld [vmem:[%s4745_s5] ss:$0 sm:$0xff] }
 0x4ec   : > { %2609 = vmatprep.mubr.bf16.mxu0 %v4085_v0  ;;  %2578 = vmatpush1.bf16.msra.mxu0 %v3700_v28  ;;  %v3750_v28 = vld [vmem:[#allocation11 + $0xf0] sm:$0xff]  }
 0x4ed   : > { %2579 = vmatprep.subr.bf16.mxu0 %v3708_v42  ;;  %v3761_v42 = vld [vmem:[#allocation11 + $0x58] sm:$0xff]  }
 0x4f0   : > { %2580 = vmatpush1.bf16.msra.mxu0 %v3706_v43  ;;  %v3763_v43 = vld [vmem:[#allocation11 + $0x18] sm:$0xff]  }
 0x4f1   : > { %2581 = vmatprep.subr.bf16.mxu0 %v3714_v45  ;;  %v3765_v45 = vld [vmem:[#allocation11 + $0x50] sm:$0xff]  }
 0x4f4   : > { %2582 = vmatpush1.bf16.msra.mxu0 %v3712_v48  ;;  %v3767_v48 = vld [vmem:[#allocation11 + $0x10] sm:$0xff]  }
 0x4f5   : > { %2583 = vmatprep.subr.bf16.mxu0 %v3720_v19  ;;  %v3771_v19 = vld [vmem:[#allocation11 + $0x8] sm:$0xff]  }
 0x4f8   : > { %2584 = vmatpush1.bf16.msra.mxu0 %v3718_v18  ;;  %v3770_v18 = vld [vmem:[#allocation11 + $0xc8] sm:$0xff]  }
 0x4f9   : > { %2585 = vmatprep.subr.bf16.mxu0 %v3726_v51  ;;  %v3773_v51 = vld [vmem:[#allocation11 + $0x40] sm:$0xff]  }
 0x4fc   : > { %2586 = vmatpush1.bf16.msra.mxu0 %v3724_v53  ;;  %v3775_v53 = vld [vmem:[#allocation11] sm:$0xff]  }
 0x4fd   : > { %2587 = vmatprep.subr.bf16.mxu0 %v3732_v27  ;;  %v2352_v27 = vld [vmem:[%s4748_s8] sm:$0xf] }
 0x4fe   : > { %v2365_v58 = vrot.slane %v2352_v27, %v578_v46  ;;  %v2369_v60 = vrot.slane %v2352_v27, %v2368_v56 }
 0x500   : > { %2588 = vmatpush1.bf16.msra.mxu0 %v3730_v57  ;;  %v2357_v57 = vrot.slane %v2352_v27, %v570_v31 }
 0x501   : > { %2589 = vmatprep.subr.bf16.mxu0 %v3738_v59  ;;  %v2361_v59 = vrot.slane %v2352_v27, %v574_v35 }
 0x504   : > { %2590 = vmatpush1.bf16.msra.mxu0 %v3736_v61 }
 0x505   : > { %2591 = vmatprep.subr.bf16.mxu0 %v3744_v63 }
 0x508   : > { %2592 = vmatpush1.bf16.msra.mxu0 %v3742_v3 }
 0x5ab   : > { %v2269_v14 = vpop.f32.mrf.mxu0 }
 0x5ac   : > { %v2270_v15 = vadd.f32 %v3291_v13, %v2269_v14 }
 0x5ad   : > { %v3540_v16 = vpop.f32.mrf.mxu0 }
 0x5ae   : > { %v2276_v20 = vadd.f32 %v3833_v17, %v2270_v15  ;;  %v3301_v16 = vld [vmem:[%s4746_s6] ss:$0 sm:$0xff] }
 0x5af   : > { %v2272_v1 = vpop.f32.mrf.mxu0 }
 0x5b0   : > { %v2273_v22 = vadd.f32 %v3291_v13, %v2272_v1  ;;  %2280 = vadd.xlane.f32.xlu0 %v2276_v20 }
 0x5b1   : > { %v3541_v23 = vpop.f32.mrf.mxu0 }
 0x5b2   : > { %v2277_v54 = vadd.f32 %v3834_v6, %v2273_v22  ;;  %v3745_v23 = vld [vmem:[#allocation11 + $0x78] sm:$0xff]  }
 0x5b3   : > { %v3746_v6 = vld [vmem:[#allocation11 + $0xf8] sm:$0xff]   ;;  %3410 = vmatprep.subr.bf16.mxu1 %v3745_v23 }
 0x5b4   : > { %2282 = vadd.xlane.f32.xlu1 %v2277_v54  ;;  %3432 = vmatprep.subr.bf16.mxu0 %v3746_v6 }
 0x639   : > { %v2281_v0 = vpop.xlane.xlu0 %2280 }
 0x63a   : > { %v2285_v33 = vmul.f32 0.0078125, %v2281_v0  ;;  %v3752_v0 = vld [vmem:[#allocation11 + $0xb0] sm:$0xff]  }
 0x63c   : > { %v4590_v34 = vsub.f32 %v2276_v20, %v2285_v33  ;;  %v3753_v33 = vld [vmem:[#allocation11 + $0x68] sm:$0xff]  }
 0x63d   : > { %v2283_v36 = vpop.xlane.xlu1 %2282 }
 0x63e   : > { %v2286_v37 = vmul.f32 0.0078125, %v2283_v36  ;;  %v2289_v38 = vmul.f32 %v4590_v34, %v4590_v34  ;;  %v3755_v36 = vld [vmem:[#allocation11 + $0x28] sm:$0xff]  }
 0x640   : > { %v4594_v39 = vsub.f32 %v2277_v54, %v2286_v37  ;;  %2291 = vadd.xlane.f32.xlu0 %v2289_v38  ;;  %v3747_v54 = vld [vmem:[#allocation11 + $0x38] sm:$0xff]   ;;  %v3756_v37 = vld [vmem:[#allocation11 + $0xa8] sm:$0xff]   ;;  %v3757_v38 = vld [vmem:[#allocation11 + $0x60] sm:$0xff]  }
 0x642   : > { %v2290_v40 = vmul.f32 %v4594_v39, %v4594_v39 }
 0x644   : > { %2293 = vadd.xlane.f32.xlu0 %v2290_v40  ;;  %v3759_v40 = vld [vmem:[#allocation11 + $0x20] sm:$0xff]  }
 0x6c9   : > { %v2292_v8 = vpop.xlane.xlu0 %2291 }
 0x6ca   : > { %v2295_v4 = vmul.f32 0.0078125, %v2292_v8 }
 0x6cc   : > { %v2297_v5 = vadd.f32 1e-05, %v2295_v4 }
 0x6cd   : > { %v2294_v7 = vpop.xlane.xlu0 %2293 }
 0x6ce   : > { %3809 = vrsqrt.f32 %v2297_v5  ;;  %v2296_v21 = vmul.f32 0.0078125, %v2294_v7 }
 0x6d0   : > { %v2298_v9 = vadd.f32 1e-05, %v2296_v21 }
 0x6d2   : > { %3811 = vrsqrt.f32 %v2298_v9 }
 0x6db   : > { %v3810_v10 = vpop.eup %3809 }
 0x6dc   : > { %v2301_v11 = vmul.f32 %v3810_v10, %v4590_v34  ;;  %v3754_v34 = vld [vmem:[#allocation11 + $0xe8] sm:$0xff]  }
 0x6de   : > { %v2309_v15 = vmul.f32 %v3300_v12, %v2301_v11 }
 0x6df   : > { %v3812_v13 = vpop.eup %3811 }
 0x6e0   : > { %v2302_v14 = vmul.f32 %v3812_v13, %v4594_v39  ;;  %v4606_v20 = vadd.f32 %v3301_v16, %v2309_v15  ;;  %v3758_v39 = vld [vmem:[#allocation11 + $0xe0] sm:$0xff]  }
 0x6e2   : > { %v2310_v17 = vmul.f32 %v3300_v12, %v2302_v14 }
 0x6e4   : > { %v4608_v1 = vadd.f32 %v3301_v16, %v2310_v17 }
 0x6e6   : > { %v2319_v22 = vpack.c.bf16 %v4608_v1, %v4606_v20 }
 0x6e8   : > { %2567 = vmatmul.mubr.bf16.vlgmr.msra.gmra.mxu1 %v2319_v22  ;;  %2610 = vmatmul.mubr.bf16.vlgmr.msra.gmra.mxu0 %v2319_v22 }
 0x6e9   : > { %3411 = vmatpush3.bf16.msra.mxu1 %v3747_v54  ;;  %3433 = vmatpush3.bf16.msra.mxu0 %v3748_v25 }
 0x6ea   : > { %3412 = vmatprep.subr.bf16.mxu1 %v3749_v26  ;;  %3434 = vmatprep.subr.bf16.mxu0 %v3750_v28 }
 0x6ed   : > { %3413 = vmatpush3.bf16.msra.mxu1 %v3751_v32  ;;  %3435 = vmatpush3.bf16.msra.mxu0 %v3752_v0 }
 0x6ee   : > { %3414 = vmatprep.subr.bf16.mxu1 %v3753_v33  ;;  %3436 = vmatprep.subr.bf16.mxu0 %v3754_v34 }
 0x6f1   : > { %3415 = vmatpush3.bf16.msra.mxu1 %v3755_v36  ;;  %3437 = vmatpush3.bf16.msra.mxu0 %v3756_v37 }
 0x6f2   : > { %3416 = vmatprep.subr.bf16.mxu1 %v3757_v38  ;;  %3438 = vmatprep.subr.bf16.mxu0 %v3758_v39 }
 0x6f5   : > { %3417 = vmatpush3.bf16.msra.mxu1 %v3759_v40  ;;  %3439 = vmatpush3.bf16.msra.mxu0 %v3760_v41 }
 0x6f6   : > { %3418 = vmatprep.subr.bf16.mxu1 %v3761_v42  ;;  %3440 = vmatprep.subr.bf16.mxu0 %v3762_v29 }
 0x6f9   : > { %3419 = vmatpush3.bf16.msra.mxu1 %v3763_v43  ;;  %3441 = vmatpush3.bf16.msra.mxu0 %v3764_v44 }
 0x6fa   : > { %3420 = vmatprep.subr.bf16.mxu1 %v3765_v45  ;;  %3442 = vmatprep.subr.bf16.mxu0 %v3766_v47 }
 0x6fd   : > { %3421 = vmatpush3.bf16.msra.mxu1 %v3767_v48  ;;  %3443 = vmatpush3.bf16.msra.mxu0 %v3768_v49 }
 0x6fe   : > { %3422 = vmatprep.subr.bf16.mxu1 %v3769_v50  ;;  %3444 = vmatprep.subr.bf16.mxu0 %v3770_v18 }
 0x701   : > { %3423 = vmatpush3.bf16.msra.mxu1 %v3771_v19  ;;  %3445 = vmatpush3.bf16.msra.mxu0 %v3772_v24 }
 0x702   : > { %3424 = vmatprep.subr.bf16.mxu1 %v3773_v51  ;;  %3446 = vmatprep.subr.bf16.mxu0 %v3774_v52 }
 0x705   : > { %3425 = vmatpush3.bf16.msra.mxu1 %v3775_v53  ;;  %3447 = vmatpush3.bf16.msra.mxu0 %v3776_v55 }
 0x7a8   : > { %v2568_v61 = vpop.f32.mrf.mxu1  ;;  %v2611_v62 = vpop.f32.mrf.mxu0 }
 0x7a9   : > { %v4622_v63 = vadd.f32 %v2568_v61, %v2357_v57  ;;  %v4624_v2 = vadd.f32 %v2611_v62, %v2365_v58 }
 0x7aa   : > { %v2570_v3 = vpop.f32.mrf.mxu1  ;;  %v2613_v8 = vpop.f32.mrf.mxu0 }
 0x7ab   : > { %v2620_v4 = vmul.f32 %v4622_v63, %v4622_v63  ;;  %v2622_v31 = vmul.f32 %v4624_v2, %v4624_v2  ;;  %v4630_v5 = vadd.f32 %v2570_v3, %v2361_v59  ;;  %v4632_v46 = vadd.f32 %v2613_v8, %v2369_v60 }
 0x7ac   : > { %v2572_v30 = vpop.f32.mrf.mxu1  ;;  %v2615_v35 = vpop.f32.mrf.mxu0 }
 0x7ad   : > { %v2628_v7 = vmul.f32 %v2620_v4, %v4622_v63  ;;  %v2630_v21 = vmul.f32 %v2622_v31, %v4624_v2  ;;  %v2621_v9 = vmul.f32 %v4630_v5, %v4630_v5  ;;  %v2623_v10 = vmul.f32 %v4632_v46, %v4632_v46 }
 0x7ae   : > { %v4640_v11 = vadd.f32 %v2572_v30, %v2357_v57  ;;  %v4642_v12 = vadd.f32 %v2615_v35, %v2365_v58  ;;  %v2574_v13 = vpop.f32.mrf.mxu1  ;;  %v2617_v14 = vpop.f32.mrf.mxu0 }
 0x7af   : > { %v2636_v15 = vmul.f32 0.044715, %v2628_v7  ;;  %v2638_v16 = vmul.f32 0.044715, %v2630_v21  ;;  %v2629_v17 = vmul.f32 %v2621_v9, %v4630_v5  ;;  %v2631_v22 = vmul.f32 %v2623_v10, %v4632_v46 }
 0x7b0   : > { %v2624_v23 = vmul.f32 %v4640_v11, %v4640_v11  ;;  %v2626_v6 = vmul.f32 %v4642_v12, %v4642_v12  ;;  %v4650_v54 = vadd.f32 %v2574_v13, %v2361_v59  ;;  %v4652_v25 = vadd.f32 %v2617_v14, %v2369_v60 }
 0x7b1   : > { %v2644_v26 = vadd.f32 %v2636_v15, %v4622_v63  ;;  %v2646_v28 = vadd.f32 %v2638_v16, %v4624_v2  ;;  %v2637_v32 = vmul.f32 0.044715, %v2629_v17  ;;  %v2639_v0 = vmul.f32 0.044715, %v2631_v22 }
 0x7b2   : > { %v2632_v33 = vmul.f32 %v2624_v23, %v4640_v11  ;;  %v2634_v34 = vmul.f32 %v2626_v6, %v4642_v12  ;;  %v2625_v36 = vmul.f32 %v4650_v54, %v4650_v54  ;;  %v2627_v37 = vmul.f32 %v4652_v25, %v4652_v25 }
 0x7b3   : > { %v2652_v38 = vmul.f32 0.7978846, %v2644_v26  ;;  %v2654_v39 = vmul.f32 0.7978846, %v2646_v28  ;;  %v2645_v40 = vadd.f32 %v2637_v32, %v4630_v5  ;;  %v2647_v41 = vadd.f32 %v2639_v0, %v4632_v46 }
 0x7b4   : > { %v2640_v42 = vmul.f32 0.044715, %v2632_v33  ;;  %v2642_v29 = vmul.f32 0.044715, %v2634_v34  ;;  %v2633_v43 = vmul.f32 %v2625_v36, %v4650_v54  ;;  %v2635_v44 = vmul.f32 %v2627_v37, %v4652_v25 }
 0x7b5   : > { %3813 = vtanh.f32 %v2652_v38  ;;  %v2653_v45 = vmul.f32 0.7978846, %v2645_v40  ;;  %v2655_v47 = vmul.f32 0.7978846, %v2647_v41 }
 0x7b6   : > { %3815 = vtanh.f32 %v2654_v39  ;;  %v2648_v48 = vadd.f32 %v2640_v42, %v4640_v11  ;;  %v2650_v49 = vadd.f32 %v2642_v29, %v4642_v12  ;;  %v2641_v50 = vmul.f32 0.044715, %v2633_v43 }
 0x7b7   : > { %3817 = vtanh.f32 %v2653_v45  ;;  %v2643_v18 = vmul.f32 0.044715, %v2635_v44 }
 0x7b8   : > { %3819 = vtanh.f32 %v2655_v47  ;;  %v2656_v19 = vmul.f32 0.7978846, %v2648_v48  ;;  %v2658_v24 = vmul.f32 0.7978846, %v2650_v49  ;;  %v2649_v51 = vadd.f32 %v2641_v50, %v4650_v54 }
 0x7b9   : > { %v2651_v52 = vadd.f32 %v2643_v18, %v4652_v25 }
 0x7ba   : > { %3821 = vtanh.f32 %v2656_v19  ;;  %v2657_v53 = vmul.f32 0.7978846, %v2649_v51 }
 0x7bb   : > { %3823 = vtanh.f32 %v2658_v24  ;;  %v2659_v55 = vmul.f32 0.7978846, %v2651_v52 }
 0x7bc   : > { %3825 = vtanh.f32 %v2657_v53 }
 0x7bd   : > { %3827 = vtanh.f32 %v2659_v55 }
 0x7c2   : > { %v3814_v27 = vpop.eup %3813 }
 0x7c3   : > { %v3816_v56 = vpop.eup %3815  ;;  %v2668_v61 = vadd.f32 1.0, %v3814_v27 }
 0x7c4   : > { %v3818_v57 = vpop.eup %3817  ;;  %v2670_v8 = vadd.f32 1.0, %v3816_v56 }
 0x7c5   : > { %v3820_v58 = vpop.eup %3819  ;;  %v2669_v59 = vadd.f32 1.0, %v3818_v57  ;;  %v2676_v10 = vmul.f32 0.5, %v2668_v61  ;;  %v3367_v61 = vld [vmem:[%s4751_s11] ss:$0 sm:$0xff] }
 0x7c6   : > { %v2671_v62 = vadd.f32 1.0, %v3820_v58  ;;  %v2678_v16 = vmul.f32 0.5, %v2670_v8 }
 0x7c7   : > { %v3822_v60 = vpop.eup %3821  ;;  %v2677_v9 = vmul.f32 0.5, %v2669_v59  ;;  %v2684_v32 = vmul.f32 %v2676_v10, %v4622_v63  ;;  %v3334_v63 = vld [vmem:[%s4750_s10] ss:$0 sm:$0xff] }
 0x7c8   : > { %v3824_v3 = vpop.eup %3823  ;;  %v2672_v4 = vadd.f32 1.0, %v3822_v60  ;;  %v2679_v15 = vmul.f32 0.5, %v2671_v62  ;;  %v2686_v34 = vmul.f32 %v2678_v16, %v4624_v2 }
 0x7c9   : > { %v3826_v31 = vpop.eup %3825  ;;  %v2674_v30 = vadd.f32 1.0, %v3824_v3  ;;  %v2685_v26 = vmul.f32 %v2677_v9, %v4630_v5  ;;  %v3368_v3 = vld [vmem:[%s4786_s19] ss:$0 sm:$0xff] }
 0x7ca   : > { %v3828_v35 = vpop.eup %3827  ;;  %v2680_v7 = vmul.f32 0.5, %v2672_v4  ;;  %v2673_v21 = vadd.f32 1.0, %v3826_v31  ;;  %v2687_v0 = vmul.f32 %v2679_v15, %v4632_v46 }
 0x7cb   : > { %v2682_v13 = vmul.f32 0.5, %v2674_v30  ;;  %v2675_v14 = vadd.f32 1.0, %v3828_v35 }
 0x7cc   : > { %v2681_v17 = vmul.f32 0.5, %v2673_v21  ;;  %v2688_v22 = vmul.f32 %v2680_v7, %v4640_v11 }
 0x7cd   : > { %v2683_v23 = vmul.f32 0.5, %v2675_v14  ;;  %v2690_v6 = vmul.f32 %v2682_v13, %v4642_v12 }
 0x7ce   : > { %v2689_v28 = vmul.f32 %v2681_v17, %v4650_v54  ;;  %v2692_v38 = vpack.c.bf16 %v2688_v22, %v2684_v32 }
 0x7cf   : > { %v2691_v33 = vmul.f32 %v2683_v23, %v4652_v25  ;;  %v2694_v11 = vpack.c.bf16 %v2690_v6, %v2686_v34 }
 0x7d0   : > { %v2693_v36 = vpack.c.bf16 %v2689_v28, %v2685_v26 }
 0x7d1   : > { %v2695_v37 = vpack.c.bf16 %v2691_v33, %v2687_v0 }
 0x7d2   : > { %2991 = vmatprep.mubr.bf16.mxu1 %v2693_v36 }
 0x7d3   : > { %3032 = vmatprep.mubr.bf16.mxu0 %v2695_v37  ;;  %2992 = vmatmul.mubr.bf16.vlgmr.msra.gmra.mxu1 %v2692_v38 }
 0x7d4   : > { %3033 = vmatmul.mubr.bf16.vlgmr.msra.gmra.mxu0 %v2694_v11 }
 0x893   : > { %v3426_v12 = vpop.f32.mrf.mxu1 }
 0x894   : > { %v3448_v5 = vpop.f32.mrf.mxu0 }
 0x895   : > { %v3427_v54 = vpop.f32.mrf.mxu1 }
 0x896   : > { %v3428_v46 = vadd.f32 %v3427_v54, %v3426_v12  ;;  %v3449_v39 = vpop.f32.mrf.mxu0 }
 0x897   : > { %v3429_v25 = vpop.f32.mrf.mxu1  ;;  %v3450_v2 = vadd.f32 %v3449_v39, %v3448_v5 }
 0x898   : > { %v2994_v40 = vadd.f32 %v3428_v46, %v3334_v63  ;;  %v3451_v41 = vpop.f32.mrf.mxu0 }
 0x899   : > { %v3430_v42 = vpop.f32.mrf.mxu1 }
 0x89a   : > { %v3035_v29 = vadd.f32 %v3450_v2, %v2994_v40  ;;  %v3431_v43 = vadd.f32 %v3430_v42, %v3429_v25  ;;  %v3452_v44 = vpop.f32.mrf.mxu0 }
 0x89b   : > { %v3453_v47 = vadd.f32 %v3452_v44, %v3451_v41 }
 0x89c   : > { %v2997_v45 = vadd.f32 %v3431_v43, %v3334_v63  ;;  %v3041_v48 = vadd.f32 %v3035_v29, %v4606_v20 }
 0x89e   : > { %v3038_v49 = vadd.f32 %v3453_v47, %v2997_v45  ;;  %3045 = vadd.xlane.f32.xlu1 %v3041_v48 }
 0x8a0   : > { %v3042_v50 = vadd.f32 %v3038_v49, %v4608_v1 }
 0x8a2   : > { %3047 = vadd.xlane.f32.xlu0 %v3042_v50 }
 0x927   : > { %v3046_v18 = vpop.xlane.xlu1 %3045 }
 0x928   : > { %v3049_v19 = vmul.f32 0.0078125, %v3046_v18 }
 0x92a   : > { %v3051_v24 = vsub.f32 %v3041_v48, %v3049_v19 }
 0x92b   : > { %v3048_v51 = vpop.xlane.xlu0 %3047 }
 0x92c   : > { %v3050_v52 = vmul.f32 0.0078125, %v3048_v51  ;;  %v3053_v53 = vmul.f32 %v3051_v24, %v3051_v24 }
 0x92e   : > { %v3052_v55 = vsub.f32 %v3042_v50, %v3050_v52  ;;  %3055 = vadd.xlane.f32.xlu1 %v3053_v53 }
 0x930   : > { %v3054_v27 = vmul.f32 %v3052_v55, %v3052_v55 }
 0x932   : > { %3057 = vadd.xlane.f32.xlu0 %v3054_v27 }
 0x9b7   : > { %v3056_v56 = vpop.xlane.xlu1 %3055 }
 0x9b8   : > { %v3059_v57 = vmul.f32 0.0078125, %v3056_v56 }
 0x9ba   : > { %v3061_v20 = vadd.f32 1e-05, %v3059_v57 }
 0x9bb   : > { %v3058_v58 = vpop.xlane.xlu0 %3057 }
 0x9bc   : > { %3829 = vrsqrt.f32 %v3061_v20  ;;  %v3060_v59 = vmul.f32 0.0078125, %v3058_v58 }
 0x9be   : > { %v3062_v1 = vadd.f32 1e-05, %v3060_v59 }
 0x9c0   : > { %3831 = vrsqrt.f32 %v3062_v1 }
 0x9c9   : > { %v3830_v60 = vpop.eup %3829 }
 0x9ca   : > { %v3065_v62 = vmul.f32 %v3830_v60, %v3051_v24 }
 0x9cc   : > { %v3073_v8 = vmul.f32 %v3367_v61, %v3065_v62 }
 0x9cd   : > { %v3832_v4 = vpop.eup %3831 }
 0x9ce   : > { %v3081_v31 = vadd.f32 %v3368_v3, %v3073_v8  ;;  %v3066_v30 = vmul.f32 %v3832_v4, %v3052_v55 }
 0x9d0   : > { %v3074_v35 = vmul.f32 %v3367_v61, %v3066_v30  ;;  %3083 = vst [vmem:[%s529_s22] sm:$0xff] %v3081_v31 }
 0x9d2   : > { %v3082_v7 = vadd.f32 %v3368_v3, %v3074_v35 }
 0x9d4   : > { %3084 = vst [vmem:[%s529_s22 + $0x8] sm:$0xff] %v3082_v7 }
 0x9d5   : > { %4006 = shalt.err (!%p4003_p3)
}
 0x9d6   : > { %s4007_s15 = scalar_lea.hbm %s4695_s23, 256  ;;  %s4011_s18 = scalar_lea.hbm %s4787_s16, 512 }
 0x9d7   : > { %p4008_p8 = scmp.ne.s32.totalorder %s4695_s23, %s4007_s15  ;;  %p4012_p12 = scmp.lt.s32.totalorder %s4695_s23, %s4787_s16 }
 0x9d8   : > { %p4013_p13 = scmp.lt.s32.totalorder %s4011_s18, %s4007_s15 }
 0x9d9   : > { %p4009_p6 = pnand %p4008_p8, %p4788_p5 }
 0x9da   : > { %p4014_p2 = por %p4013_p13, %p4012_p12 }
 0x9db   : > { %p4010_p10 = pneg %p4009_p6 }
 0x9dd   : > { %p4015_p4 = pnand %p4014_p2, %p4010_p10 }
 0x9df   : > { %4018 = shalt.err (!%p4015_p4)
}
 0x9e0   : > { %s4094_s4 = smov 128   ;;  %s4095_s1 = smov 8  }
 0x9e1   : > { %3564 = dma.vmem_to_hbm [thread:$0]  (%p4788_p5), %s4697_s12, 256, %s4695_s23, %s3086_s29, %s4094_s4, %s4094_s4, %s4095_s1  }
 0x9e2 PF: > { %s3114_s14 = sand.u32 1, %s4057_s25   ;;  %p4789_p9 = scmp.ne.s32.totalorder %s4776_s17, 0 }
 0x9e3   : > { %p4790_p11 = scmp.ge.s32.totalorder %s4069_s28, 2  ;;  %s3115_s9 = scalar_lea.sflag [#allocation4], %s3114_s14 }
 0x9e5   : > { %p3587_p7 = pnand %p4790_p11, %p4789_p9 }
 0x9e7   : > { %p3588_p0 = pneg %p3587_p7 }
 0x9e9   : > { %4052 = dma.done.wait (%p3588_p0), %s3115_s9, 256  }
 0x9ea   : > { %4054 = vsyncadd (%p3588_p0), %s3115_s9, 4294967040  ;;  %p29_p1 = scmp.ge.s32.totalorder %s4261_s21, 4   ;;  %s4791_s25 = smov %s4061_s26 }
 0x9eb   : > { %s4792_s26 = smov %s4065_s27  ;;  %s4793_s27 = smov %s4273_s30 }
 0x9ec   : > { %s4794_s28 = smov %s4261_s21  ;;  %31 = sbr.rel (!%p29_p1) target bundleno = 16 (0x10), region = 137 }
 0x9f1   :  { %3120 = vsyncpa [#allocation3], 1 }
 0x9f2   :  { %3122 = vsyncpa [#allocation3 + $0x1], 1 }
 0x9f3   :  { %3123 = vsyncpa [#allocation6], 1 }
 0x9f4   :  { %3124 = vsyncpa [#allocation9], 1 }
 0x9f5   :  { %3125 = vsyncpa [#allocation12], 1 }
 0x9f6   :  { %3126 = vsyncpa [#allocation4], 1 }
 0x9f7   :  { %3128 = vsyncpa [#allocation4 + $0x1], 1 }

</bundles_post_ra>
